<compile_context>
chip_gen: v5e
topology: v5e:2x2
jax: 0.10.0
libtpu: 0.0.40
codegen_flags: <defaults>
</compile_context>

<pallas_src>
import functools

import jax
import jax.numpy as jnp
from jax.experimental import pallas as pl
from jax.experimental.pallas import tpu as pltpu

_EPS = 1e-5  # PyTorch BatchNorm2d default eps


def _round_up(x, m):
    return (x + m - 1) // m * m


def _cdiv(a, b):
    return -(-a // b)


def _leaky(v):
    return jnp.where(v > 0, v, 0.2 * v)


# ----------------------------------------------------------------------------
# Optional single-buffering of grid-invariant operands (weights / bias)
# ----------------------------------------------------------------------------
_SINGLE_BUF = None


def _single_buffer_ok():
    """Probe once whether pipeline_mode=pl.Buffered(1) works on this JAX/TPU."""
    global _SINGLE_BUF
    if _SINGLE_BUF is None:
        try:
            if not hasattr(pl, "Buffered"):
                raise AttributeError("pl.Buffered missing")

            def k(a_ref, w_ref, o_ref):
                o_ref[...] = a_ref[...] + w_ref[...]

            out = pl.pallas_call(
                k,
                out_shape=jax.ShapeDtypeStruct((16, 128), jnp.float32),
                grid=(2,),
                in_specs=[
                    pl.BlockSpec((8, 128), lambda i: (i, 0)),
                    pl.BlockSpec((8, 128), lambda i: (0, 0),
                                 pipeline_mode=pl.Buffered(1)),
                ],
                out_specs=pl.BlockSpec((8, 128), lambda i: (i, 0)),
            )(jnp.ones((16, 128), jnp.float32), jnp.ones((8, 128), jnp.float32))
            jax.block_until_ready(out)
            _SINGLE_BUF = bool(abs(float(out[0, 0]) - 2.0) < 1e-5)
        except Exception:  # any failure -> fall back to default double buffering
            _SINGLE_BUF = False
    return _SINGLE_BUF


def _const_spec(shape, imap):
    """BlockSpec for operands whose index_map is constant across the grid."""
    if _single_buffer_ok():
        try:
            return pl.BlockSpec(shape, imap, pipeline_mode=pl.Buffered(1))
        except TypeError:
            pass
    return pl.BlockSpec(shape, imap)


# ----------------------------------------------------------------------------
# Pallas kernel: channels-first conv-as-GEMM with in-kernel tap streaming
# ----------------------------------------------------------------------------
def _conv_tap_kernel(*refs, taps_off, activation, has_halo, has_add):
    """refs: x (Cin_p, tile[+halo reach]), [halo (Cin_p, thalo)],
             w (T, Cout_p, Cin_p), bias (Cout_p, 1), [add (Cout_p, tile)],
             out (Cout_p, tile)."""
    idx = 0
    x_ref = refs[idx]; idx += 1
    xh_ref = None
    if has_halo:
        xh_ref = refs[idx]; idx += 1
    w_ref = refs[idx]; idx += 1
    b_ref = refs[idx]; idx += 1
    add_ref = None
    if has_add:
        add_ref = refs[idx]; idx += 1
    o_ref = refs[idx]
    assert idx == len(refs) - 1

    width = o_ref.shape[1]
    xb = x_ref[...]
    if has_halo:
        xb = jnp.concatenate([xb, xh_ref[...]], axis=1)

    off0 = taps_off[0]
    acc = jnp.dot(w_ref[0], xb[:, off0:off0 + width],
                  preferred_element_type=jnp.float32)
    for t in range(1, len(taps_off)):
        off = taps_off[t]
        acc = acc + jnp.dot(w_ref[t], xb[:, off:off + width],
                            preferred_element_type=jnp.float32)
    acc = acc + b_ref[...]
    if has_add:
        acc = acc + add_ref[...].astype(jnp.float32)
    if activation == "leaky":
        acc = jnp.where(acc > 0, acc, 0.2 * acc)
    elif activation == "relu":
        acc = jnp.maximum(acc, 0.0)
    elif activation == "tanh120":
        acc = jnp.tanh(acc) * 120.0
    o_ref[...] = acc.astype(o_ref.dtype)


# ----------------------------------------------------------------------------
# Conv wrapper (stride-1 convs of any kernel size, optional fused add/activation)
# ----------------------------------------------------------------------------
def conv2d(x, layer, *, padding=0, activation="none",
           add_flat=None, raw_out=False, out_dtype=jnp.bfloat16):
    """x: (N, Cin, H, W).  layer: prepared dict from _prep_conv.

    Returns (N, Cout, Ho, Wo); with raw_out=True returns a list (per image) of
    raw flat outputs (Cout_p, Lout_pad) that can be fed back as `add_flat`."""
    N, C, H, W = x.shape
    kh, kw, cin, cout = layer["kh"], layer["kw"], layer["cin"], layer["cout"]
    T, cout_p, cin_p = layer["w"].shape
    assert C == cin, (C, cin)
    p = padding
    Hp, Wp = H + 2 * p, W + 2 * p
    Ho, Wo = Hp - kh + 1, Wp - kw + 1
    L_out = Ho * Wp                       # output computed at padded width, cropped later
    taps_off = tuple(di * Wp + dj for di in range(kh) for dj in range(kw))
    max_off = max(taps_off)

    multi = L_out > 4096                  # tiny deep layers: one full-array block
    if multi:
        use_halo = T > 1
        thalo = _round_up(max_off, 512) if use_halo else 0
        # ~4 tiles: amortizes per-step overhead, keeps the "parallel" axis
        # splittable across both v7x TensorCores; v5e/v6e just see bigger tiles.
        tl = _round_up(_cdiv(L_out, 4), 512)
        if use_halo:
            tl = max(_round_up(tl, thalo), thalo)
        tl = min(tl, 32768)
        n_tiles = _cdiv(L_out, tl)
        Lout_pad = n_tiles * tl
        Lin_pad = Lout_pad + thalo
    else:
        use_halo = False
        thalo = 0
        tl = L_out
        n_tiles = 1
        Lout_pad = L_out
        Lin_pad = Hp * Wp + (kw - 1)      # exact tap reach, no column padding

    wk, bk = layer["w"], layer["b"]
    kernel = functools.partial(
        _conv_tap_kernel, taps_off=taps_off, activation=activation,
        has_halo=use_halo, has_add=add_flat is not None)

    # computed VMEM budget from the actual block footprint
    x_bytes = cin_p * (tl if multi else Lin_pad) * 2
    h_bytes = cin_p * thalo * 2
    w_bytes = int(wk.size) * 2
    a_bytes = cout_p * tl * 4 if add_flat is not None else 0
    o_bytes = cout_p * tl * jnp.dtype(out_dtype).itemsize
    tmp_bytes = cout_p * tl * 4 + 2 * cin_p * (tl + thalo) * 2
    est = 2 * (x_bytes + h_bytes + a_bytes + o_bytes) + 2 * w_bytes + tmp_bytes
    vmem_limit = int(min(64 * 1024 * 1024, max(32 * 1024 * 1024, 3 * est)))
    cparams = pltpu.CompilerParams(dimension_semantics=("parallel",),
                                   vmem_limit_bytes=vmem_limit)

    if multi:
        out_block = (cout_p, tl)
        out_imap = lambda i: (0, i)
    else:
        out_block = (cout_p, Lout_pad)
        out_imap = lambda i: (0, 0)

    outs = []
    for n in range(N):
        xi = x[n].astype(jnp.bfloat16)
        xi = jnp.pad(xi, ((0, cin_p - cin), (p, p), (p, p)))
        xi = xi.reshape(cin_p, Hp * Wp)
        xi = jnp.pad(xi, ((0, 0), (0, Lin_pad - Hp * Wp)))

        if multi:
            in_specs = [pl.BlockSpec((cin_p, tl), lambda i: (0, i))]
            args = [xi]
            if use_halo:
                r = tl // thalo
                in_specs.append(
                    pl.BlockSpec((cin_p, thalo), lambda i, r=r: (0, (i + 1) * r)))
                args.append(xi)
        else:
            in_specs = [pl.BlockSpec((cin_p, Lin_pad), lambda i: (0, 0))]
            args = [xi]

        in_specs.append(_const_spec((T, cout_p, cin_p), lambda i: (0, 0, 0)))
        args.append(wk)
        in_specs.append(_const_spec((cout_p, 1), lambda i: (0, 0)))
        args.append(bk)
        if add_flat is not None:
            in_specs.append(pl.BlockSpec(out_block, out_imap))
            args.append(add_flat[n])

        out_flat = pl.pallas_call(
            kernel,
            out_shape=jax.ShapeDtypeStruct((cout_p, Lout_pad), out_dtype),
            grid=(n_tiles,),
            in_specs=in_specs,
            out_specs=pl.BlockSpec(out_block, out_imap),
            compiler_params=cparams,
        )(*args)

        if raw_out:
            outs.append(out_flat)
        else:
            o = out_flat[:cout, :L_out].reshape(cout, Ho, Wp)[:, :, :Wo]
            outs.append(o)
    if raw_out:
        return outs
    return jnp.stack(outs, axis=0)


# ----------------------------------------------------------------------------
# Glue ops (NCHW)
# ----------------------------------------------------------------------------
def maxpool2(x):
    N, C, H, W = x.shape
    return x.reshape(N, C, H // 2, 2, W // 2, 2).max(axis=(3, 5))


def _interp_matrix(src, dst):
    """(dst, src) 1-D bilinear interpolation matrix, align_corners=True."""
    pos = jnp.arange(dst, dtype=jnp.float32) * (src - 1) / (dst - 1)
    i0 = jnp.clip(jnp.floor(pos).astype(jnp.int32), 0, src - 1)
    i1 = jnp.clip(i0 + 1, 0, src - 1)
    t = pos - i0.astype(jnp.float32)
    return (jax.nn.one_hot(i0, src, dtype=jnp.float32) * (1.0 - t)[:, None]
            + jax.nn.one_hot(i1, src, dtype=jnp.float32) * t[:, None])


def upsample2x_bilinear(x):
    """nn.Upsample(scale_factor=2, mode='bilinear', align_corners=True) as two
    separable bf16 interpolation matmuls (no gathers, half the HBM traffic)."""
    N, C, H, W = x.shape
    Uy = _interp_matrix(H, 2 * H).astype(jnp.bfloat16)
    Ux = _interp_matrix(W, 2 * W).astype(jnp.bfloat16)
    xb = x.astype(jnp.bfloat16)
    y = jnp.einsum('oh,nchw->ncow', Uy, xb)
    y = jnp.einsum('pw,ncow->ncop', Ux, y)
    return y


def center_crop(img, new_h, new_w):
    # TODO(synk): crop() helper is not defined in the provided source; implemented
    # as the standard center crop (offset = (H - new_h) // 2) used by this UNet family.
    H, W = img.shape[2], img.shape[3]
    sh = (H - new_h) // 2
    sw = (W - new_w) // 2
    return img[:, :, sh:sh + new_h, sw:sw + new_w]


def fold_bn(w, b, bn):
    """Fold eval-mode BatchNorm (applied right after a conv) into conv weights."""
    scale = bn["gamma"] / jnp.sqrt(bn["var"] + _EPS)
    return w * scale, (b - bn["mean"]) * scale + bn["beta"]


def bn_apply(x, bn):
    scale = (bn["gamma"] / jnp.sqrt(bn["var"] + _EPS)).reshape(1, -1, 1, 1)
    mean = bn["mean"].reshape(1, -1, 1, 1)
    beta = bn["beta"].reshape(1, -1, 1, 1)
    return ((x - mean) * scale + beta).astype(x.dtype)


# ----------------------------------------------------------------------------
# Blocks
# ----------------------------------------------------------------------------
def contracting_block(bp, x):
    # conv -> BN (folded) -> (Dropout: eval-mode identity) -> LeakyReLU(0.2), x2, maxpool
    x = conv2d(x, bp["conv1"], padding=1, activation="leaky")
    x = conv2d(x, bp["conv2"], padding=1, activation="leaky")
    x = maxpool2(x)
    # TODO(synk): CBAM class is not defined in the provided source; attention = identity.
    return x


def expanding_block(bp, x, skip):
    x = upsample2x_bilinear(x)
    x = conv2d(x, bp["conv1"], padding=0, activation="none")
    skip = center_crop(skip, x.shape[2], x.shape[3]).astype(jnp.bfloat16)
    # concat-free conv2: K split at the channel boundary, two accumulating passes
    part = conv2d(x, bp["conv2_x"], padding=1, activation="none",
                  raw_out=True, out_dtype=jnp.float32)
    x = conv2d(skip, bp["conv2_skip"], padding=1, activation="relu",
               add_flat=part)
    x = conv2d(x, bp["conv3"], padding=1, activation="relu")
    # TODO(synk): CBAM class is not defined in the provided source; attention = identity.
    return x


# ----------------------------------------------------------------------------
# Parameter init (deterministic, in-script) and one-time kernel-layout prep
# ----------------------------------------------------------------------------
def _init_conv(key, kh, kw, cin, cout):
    k1, k2 = jax.random.split(key)
    fan_in = kh * kw * cin
    w = jax.random.normal(k1, (kh, kw, cin, cout), jnp.float32) / jnp.sqrt(fan_in)
    b = 0.01 * jax.random.normal(k2, (cout,), jnp.float32)
    return {"w": w, "b": b}


def _init_linear(key, cin, cout):
    k1, k2 = jax.random.split(key)
    w = jax.random.normal(k1, (cin, cout), jnp.float32) / jnp.sqrt(cin)
    b = 0.01 * jax.random.normal(k2, (cout,), jnp.float32)
    return {"w": w, "b": b}


def _init_bn(key, c):
    k1, k2 = jax.random.split(key)
    return {
        "gamma": 1.0 + 0.1 * jax.random.normal(k1, (c,), jnp.float32),
        "beta": 0.1 * jax.random.normal(k2, (c,), jnp.float32),
        "mean": jnp.zeros((c,), jnp.float32),
        "var": jnp.ones((c,), jnp.float32),
    }


def init_params(key, in_chan, out_chan, output_dim, hc):
    keys = iter(jax.random.split(key, 128))
    p = {}
    p["upfeature"] = _init_conv(next(keys), 1, 1, in_chan, hc)
    c = hc
    for i in range(1, 7):
        p[f"contract{i}"] = {
            "conv1": _init_conv(next(keys), 3, 3, c, 2 * c),
            "conv2": _init_conv(next(keys), 3, 3, 2 * c, 2 * c),
            "bn": _init_bn(next(keys), 2 * c),
        }
        c *= 2
    p["feature1"] = _init_conv(next(keys), 1, 1, 64 * hc, 32 * hc)
    p["feature2"] = _init_conv(next(keys), 1, 1, 32 * hc, 16 * hc)
    p["bn1"] = _init_bn(next(keys), 32 * hc)
    p["bn2"] = _init_bn(next(keys), 16 * hc)
    p["linear1"] = _init_linear(next(keys), 32 * hc, 32 * hc)
    p["linear2"] = _init_linear(next(keys), 32 * hc, output_dim)
    p["feature_map"] = _init_conv(next(keys), 1, 1, 64 * hc, 48 * hc)
    c = 64 * hc
    for i in range(6):
        p[f"expand{i}"] = {
            "conv1": _init_conv(next(keys), 2, 2, c, c // 2),
            "conv2": _init_conv(next(keys), 3, 3, c, c // 2),
            "conv3": _init_conv(next(keys), 2, 2, c // 2, c // 2),
            "bn": _init_bn(next(keys), c // 2),
        }
        c //= 2
    p["downfeature"] = _init_conv(next(keys), 1, 1, hc, out_chan)
    return p


def _prep_conv(w, b):
    """Pack conv weights into kernel layout: (taps, Cout_p, Cin_p) bf16 + fp32 bias."""
    kh, kw, cin, cout = w.shape
    cin_p, cout_p = _round_up(cin, 8), _round_up(cout, 8)
    wt = jnp.transpose(w, (0, 1, 3, 2)).reshape(kh * kw, cout, cin)
    wt = jnp.pad(wt, ((0, 0), (0, cout_p - cout), (0, cin_p - cin))).astype(jnp.bfloat16)
    bp = jnp.pad(b.astype(jnp.float32), (0, cout_p - cout)).reshape(cout_p, 1)
    return {"w": wt, "b": bp, "kh": kh, "kw": kw, "cin": cin, "cout": cout}


def prepare_params(params):
    """One-time weight preprocessing hoisted out of the traced forward."""
    prep = {"upfeature": _prep_conv(params["upfeature"]["w"], params["upfeature"]["b"])}
    for i in range(1, 7):
        p = params[f"contract{i}"]
        w1, b1 = fold_bn(p["conv1"]["w"], p["conv1"]["b"], p["bn"])
        w2, b2 = fold_bn(p["conv2"]["w"], p["conv2"]["b"], p["bn"])
        prep[f"contract{i}"] = {"conv1": _prep_conv(w1, b1), "conv2": _prep_conv(w2, b2)}
    # feature1 and feature_map both consume x6: pack side-by-side along Cout
    wf = jnp.concatenate([params["feature1"]["w"], params["feature_map"]["w"]], axis=3)
    bf = jnp.concatenate([params["feature1"]["b"], params["feature_map"]["b"]], axis=0)
    prep["feat1_map"] = _prep_conv(wf, bf)
    prep["feature2"] = _prep_conv(params["feature2"]["w"], params["feature2"]["b"])
    prep["bn1"], prep["bn2"] = params["bn1"], params["bn2"]
    prep["linear1"], prep["linear2"] = params["linear1"], params["linear2"]
    for i in range(6):
        p = params[f"expand{i}"]
        ch = p["conv1"]["w"].shape[3]          # input_channels // 2
        w2, b2 = fold_bn(p["conv2"]["w"], p["conv2"]["b"], p["bn"])
        w3, b3 = fold_bn(p["conv3"]["w"], p["conv3"]["b"], p["bn"])
        prep[f"expand{i}"] = {
            "conv1": _prep_conv(p["conv1"]["w"], p["conv1"]["b"]),
            "conv2_x": _prep_conv(w2[:, :, :ch, :], jnp.zeros_like(b2)),
            "conv2_skip": _prep_conv(w2[:, :, ch:, :], b2),
            "conv3": _prep_conv(w3, b3),
        }
    prep["downfeature"] = _prep_conv(params["downfeature"]["w"], params["downfeature"]["b"])
    return prep


# ----------------------------------------------------------------------------
# Full forward (UNet_Classfier.forward, eval mode), NCHW in / NCHW out
# ----------------------------------------------------------------------------
def unet_classifier_forward(prep, x_nchw):
    x0 = conv2d(x_nchw, prep["upfeature"])
    x1 = contracting_block(prep["contract1"], x0)
    x2 = contracting_block(prep["contract2"], x1)
    x3 = contracting_block(prep["contract3"], x2)
    x4 = contracting_block(prep["contract4"], x3)
    x5 = contracting_block(prep["contract5"], x4)
    x6 = contracting_block(prep["contract6"], x5)

    c32 = prep["feature2"]["cin"]
    both = conv2d(x6, prep["feat1_map"], activation="none", out_dtype=jnp.float32)
    # classify = feature1(x6); LeakyReLU(0.2) in-place; classify = bn1(classify)
    classify = bn_apply(_leaky(both[:, :c32]), prep["bn1"])
    featmap = both[:, c32:].astype(jnp.bfloat16)

    # feature = feature2(classify); LeakyReLU(0.2) in-place; feature = bn2(feature)
    feature = conv2d(classify, prep["feature2"], activation="leaky")
    feature = bn_apply(feature, prep["bn2"])

    # classifier head (M == 1): plain fp32 dots, no Pallas launch.  The LeakyReLU
    # between linear1/linear2 is constructed but never applied in the reference.
    pooled = maxpool2(classify).reshape(classify.shape[0], -1)
    output = pooled @ prep["linear1"]["w"] + prep["linear1"]["b"]
    output = output @ prep["linear2"]["w"] + prep["linear2"]["b"]

    x6_prime = jnp.concatenate([featmap, feature.astype(jnp.bfloat16)], axis=1)

    x7 = expanding_block(prep["expand0"], x6_prime, x5)
    x8 = expanding_block(prep["expand1"], x7, x4)
    x9 = expanding_block(prep["expand2"], x8, x3)
    x10 = expanding_block(prep["expand3"], x9, x2)
    x11 = expanding_block(prep["expand4"], x10, x1)
    x12 = expanding_block(prep["expand5"], x11, x0)

    xn = conv2d(x12, prep["downfeature"], activation="tanh120", out_dtype=jnp.float32)
    return output, xn


# ----------------------------------------------------------------------------
# Small numerical self-check of the conv kernel against lax.conv
# ----------------------------------------------------------------------------
def _self_test():
    k = jax.random.PRNGKey(1)
    for (spatial, cin, cout, kk, pad) in [(80, 5, 7, 3, 1), (9, 6, 10, 2, 1)]:
        kx, kw_, kb, k = jax.random.split(k, 4)
        x = jax.random.normal(kx, (1, cin, spatial, spatial), jnp.float32)
        w = jax.random.normal(kw_, (kk, kk, cin, cout), jnp.float32) * 0.2
        b = jax.random.normal(kb, (cout,), jnp.float32) * 0.1
        out = conv2d(x, _prep_conv(w, b), padding=pad, activation="none",
                     out_dtype=jnp.float32).astype(jnp.float32)
        xb = x.astype(jnp.bfloat16).astype(jnp.float32)
        wb = w.astype(jnp.bfloat16).astype(jnp.float32)
        ref = jax.lax.conv_general_dilated(
            xb, jnp.transpose(wb, (3, 2, 0, 1)),
            window_strides=(1, 1), padding=((pad, pad), (pad, pad)),
            dimension_numbers=("NCHW", "OIHW", "NCHW")) + b.reshape(1, -1, 1, 1)
        err = float(jnp.max(jnp.abs(out - ref)))
        assert err < 5e-2, f"conv kernel mismatch (err={err})"


# ----------------------------------------------------------------------------
if __name__ == "__main__":
    key = jax.random.PRNGKey(0)
    kp, kx = jax.random.split(key)

    # Small config: the architecture requires spatial 128x128 (6 halvings + the
    # final 2x2 maxpool must reach 1x1 for .squeeze(2).squeeze(2)); channels small.
    in_chan, out_chan, output_dim, hidden_chan = 3, 2, 5, 4
    H = W = 128
    batch = 1

    _single_buffer_ok()   # probe once, outside any trace
    _self_test()

    params = init_params(kp, in_chan, out_chan, output_dim, hidden_chan)
    prep = prepare_params(params)   # weight prep hoisted out of the traced forward
    x = jax.random.normal(kx, (batch, in_chan, H, W), jnp.float32)

    fwd = jax.jit(lambda inp: unet_classifier_forward(prep, inp))
    out_vec, out_img = fwd(x)
    jax.block_until_ready((out_vec, out_img))

    assert out_vec.shape == (batch, output_dim), out_vec.shape
    assert out_img.shape == (batch, out_chan, H, W), out_img.shape
    assert bool(jnp.all(jnp.isfinite(out_vec))) and bool(jnp.all(jnp.isfinite(out_img)))
    assert bool(jnp.all(jnp.abs(out_img) <= 120.0 + 1e-3))
    print("KERNEL_OK")
</pallas_src>

<mosaic_0001>
module attributes {stable_mosaic.version = 11 : i64} {
  func.func @k(%arg0: i32, %arg1: memref<8x128xf32, #tpu.memory_space<vmem>>, %arg2: memref<8x128xf32, #tpu.memory_space<vmem>>, %arg3: memref<8x128xf32, #tpu.memory_space<vmem>>) attributes {dimension_semantics = [#tpu.dimension_semantics<arbitrary>], iteration_bounds = array<i64: 2>, scalar_prefetch = 0 : i64, scratch_operands = 0 : i64, tpu.core_type = #tpu.core_type<tc>, window_params = [{transform_indices = @transform_0, window_bounds = array<i64: 8, 128>}, {pipeline_mode = #tpu.pipeline_mode<synchronous>, transform_indices = @transform_1, window_bounds = array<i64: 8, 128>}, {transform_indices = @transform_2, window_bounds = array<i64: 8, 128>}]} {
    %c0 = arith.constant 0 : index
    %c0_0 = arith.constant 0 : index
    %0 = vector.load %arg1[%c0, %c0_0] : memref<8x128xf32, #tpu.memory_space<vmem>>, vector<8x128xf32>
    %c0_1 = arith.constant 0 : index
    %c0_2 = arith.constant 0 : index
    %1 = vector.load %arg2[%c0_1, %c0_2] : memref<8x128xf32, #tpu.memory_space<vmem>>, vector<8x128xf32>
    %2 = arith.addf %0, %1 : vector<8x128xf32>
    %c0_3 = arith.constant 0 : index
    %c0_4 = arith.constant 0 : index
    %3 = vector.load %arg3[%c0_3, %c0_4] : memref<8x128xf32, #tpu.memory_space<vmem>>, vector<8x128xf32>
    tpu.vector_store %arg3[%c0_3, %c0_4], %2 {strides = array<i32>} : memref<8x128xf32, #tpu.memory_space<vmem>>, vector<8x128xf32>,
    return
  }
  func.func @transform_0(%arg0: i32) -> (i32, i32) {
    %c0_i32 = arith.constant 0 : i32
    %c0_i32_0 = arith.constant 0 : i32
    return %arg0, %c0_i32 : i32, i32
  }
  func.func @transform_1(%arg0: i32) -> (i32, i32) {
    %c0_i32 = arith.constant 0 : i32
    %c0_i32_0 = arith.constant 0 : i32
    %c0_i32_1 = arith.constant 0 : i32
    return %c0_i32, %c0_i32_0 : i32, i32
  }
  func.func @transform_2(%arg0: i32) -> (i32, i32) {
    %c0_i32 = arith.constant 0 : i32
    %c0_i32_0 = arith.constant 0 : i32
    return %arg0, %c0_i32 : i32, i32
  }
}

module attributes {stable_mosaic.version = 11 : i64} {
  func.func @_conv_tap_kernel(%arg0: i32, %arg1: memref<8x2048xbf16, #tpu.memory_space<vmem>>, %arg2: memref<8x512xbf16, #tpu.memory_space<vmem>>, %arg3: memref<9x8x8xbf16, #tpu.memory_space<vmem>>, %arg4: memref<8x1xf32, #tpu.memory_space<vmem>>, %arg5: memref<8x2048xf32, #tpu.memory_space<vmem>>) attributes {dimension_semantics = [#tpu.dimension_semantics<parallel>], iteration_bounds = array<i64: 4>, scalar_prefetch = 0 : i64, scratch_operands = 0 : i64, tpu.core_type = #tpu.core_type<tc>, window_params = [{transform_indices = @transform_0, window_bounds = array<i64: 8, 2048>}, {transform_indices = @transform_1, window_bounds = array<i64: 8, 512>}, {pipeline_mode = #tpu.pipeline_mode<synchronous>, transform_indices = @transform_2, window_bounds = array<i64: 9, 8, 8>}, {pipeline_mode = #tpu.pipeline_mode<synchronous>, transform_indices = @transform_3, window_bounds = array<i64: 8, 1>}, {transform_indices = @transform_4, window_bounds = array<i64: 8, 2048>}]} {
    %c0 = arith.constant 0 : index
    %c0_0 = arith.constant 0 : index
    %0 = vector.load %arg1[%c0, %c0_0] : memref<8x2048xbf16, #tpu.memory_space<vmem>>, vector<8x2048xbf16>
    %c0_1 = arith.constant 0 : index
    %c0_2 = arith.constant 0 : index
    %1 = vector.load %arg2[%c0_1, %c0_2] : memref<8x512xbf16, #tpu.memory_space<vmem>>, vector<8x512xbf16>
    %2 = tpu.concatenate %0, %1 in 1 : vector<8x2048xbf16>, vector<8x512xbf16> -> vector<8x2560xbf16>
    %c0_3 = arith.constant 0 : index
    %c0_4 = arith.constant 0 : index
    %c0_5 = arith.constant 0 : index
    %3 = vector.load %arg3[%c0_3, %c0_4, %c0_5] : memref<9x8x8xbf16, #tpu.memory_space<vmem>>, vector<1x8x8xbf16>
    %4 = vector.shape_cast %3 : vector<1x8x8xbf16> to vector<8x8xbf16>
    %5 = vector.extract_strided_slice %2 {offsets = [0, 0], sizes = [8, 2048], strides = [1, 1]} : vector<8x2560xbf16> to vector<8x2048xbf16>
    %cst = arith.constant dense<0.000000e+00> : vector<8x2048xf32>
    %6 = tpu.matmul %4, %5, %cst {dimension_numbers = #tpu.dot_dimension_numbers<[1], [0], [0], [1], [0, 0, 1, 1], [], []>} : vector<8x8xbf16>, vector<8x2048xbf16>, vector<8x2048xf32> -> vector<8x2048xf32>
    %c1 = arith.constant 1 : index
    %c0_6 = arith.constant 0 : index
    %c0_7 = arith.constant 0 : index
    %7 = vector.load %arg3[%c1, %c0_6, %c0_7] : memref<9x8x8xbf16, #tpu.memory_space<vmem>>, vector<1x8x8xbf16>
    %8 = vector.shape_cast %7 : vector<1x8x8xbf16> to vector<8x8xbf16>
    %9 = vector.extract_strided_slice %2 {offsets = [0, 1], sizes = [8, 2048], strides = [1, 1]} : vector<8x2560xbf16> to vector<8x2048xbf16>
    %cst_8 = arith.constant dense<0.000000e+00> : vector<8x2048xf32>
    %10 = tpu.matmul %8, %9, %cst_8 {dimension_numbers = #tpu.dot_dimension_numbers<[1], [0], [0], [1], [0, 0, 1, 1], [], []>} : vector<8x8xbf16>, vector<8x2048xbf16>, vector<8x2048xf32> -> vector<8x2048xf32>
    %11 = arith.addf %6, %10 : vector<8x2048xf32>
    %c2 = arith.constant 2 : index
    %c0_9 = arith.constant 0 : index
    %c0_10 = arith.constant 0 : index
    %12 = vector.load %arg3[%c2, %c0_9, %c0_10] : memref<9x8x8xbf16, #tpu.memory_space<vmem>>, vector<1x8x8xbf16>
    %13 = vector.shape_cast %12 : vector<1x8x8xbf16> to vector<8x8xbf16>
    %14 = vector.extract_strided_slice %2 {offsets = [0, 2], sizes = [8, 2048], strides = [1, 1]} : vector<8x2560xbf16> to vector<8x2048xbf16>
    %cst_11 = arith.constant dense<0.000000e+00> : vector<8x2048xf32>
    %15 = tpu.matmul %13, %14, %cst_11 {dimension_numbers = #tpu.dot_dimension_numbers<[1], [0], [0], [1], [0, 0, 1, 1], [], []>} : vector<8x8xbf16>, vector<8x2048xbf16>, vector<8x2048xf32> -> vector<8x2048xf32>
    %16 = arith.addf %11, %15 : vector<8x2048xf32>
    %c3 = arith.constant 3 : index
    %c0_12 = arith.constant 0 : index
    %c0_13 = arith.constant 0 : index
    %17 = vector.load %arg3[%c3, %c0_12, %c0_13] : memref<9x8x8xbf16, #tpu.memory_space<vmem>>, vector<1x8x8xbf16>
    %18 = vector.shape_cast %17 : vector<1x8x8xbf16> to vector<8x8xbf16>
    %19 = vector.extract_strided_slice %2 {offsets = [0, 82], sizes = [8, 2048], strides = [1, 1]} : vector<8x2560xbf16> to vector<8x2048xbf16>
    %cst_14 = arith.constant dense<0.000000e+00> : vector<8x2048xf32>
    %20 = tpu.matmul %18, %19, %cst_14 {dimension_numbers = #tpu.dot_dimension_numbers<[1], [0], [0], [1], [0, 0, 1, 1], [], []>} : vector<8x8xbf16>, vector<8x2048xbf16>, vector<8x2048xf32> -> vector<8x2048xf32>
    %21 = arith.addf %16, %20 : vector<8x2048xf32>
    %c4 = arith.constant 4 : index
    %c0_15 = arith.constant 0 : index
    %c0_16 = arith.constant 0 : index
    %22 = vector.load %arg3[%c4, %c0_15, %c0_16] : memref<9x8x8xbf16, #tpu.memory_space<vmem>>, vector<1x8x8xbf16>
    %23 = vector.shape_cast %22 : vector<1x8x8xbf16> to vector<8x8xbf16>
    %24 = vector.extract_strided_slice %2 {offsets = [0, 83], sizes = [8, 2048], strides = [1, 1]} : vector<8x2560xbf16> to vector<8x2048xbf16>
    %cst_17 = arith.constant dense<0.000000e+00> : vector<8x2048xf32>
    %25 = tpu.matmul %23, %24, %cst_17 {dimension_numbers = #tpu.dot_dimension_numbers<[1], [0], [0], [1], [0, 0, 1, 1], [], []>} : vector<8x8xbf16>, vector<8x2048xbf16>, vector<8x2048xf32> -> vector<8x2048xf32>
    %26 = arith.addf %21, %25 : vector<8x2048xf32>
    %c5 = arith.constant 5 : index
    %c0_18 = arith.constant 0 : index
    %c0_19 = arith.constant 0 : index
    %27 = vector.load %arg3[%c5, %c0_18, %c0_19] : memref<9x8x8xbf16, #tpu.memory_space<vmem>>, vector<1x8x8xbf16>
    %28 = vector.shape_cast %27 : vector<1x8x8xbf16> to vector<8x8xbf16>
    %29 = vector.extract_strided_slice %2 {offsets = [0, 84], sizes = [8, 2048], strides = [1, 1]} : vector<8x2560xbf16> to vector<8x2048xbf16>
    %cst_20 = arith.constant dense<0.000000e+00> : vector<8x2048xf32>
    %30 = tpu.matmul %28, %29, %cst_20 {dimension_numbers = #tpu.dot_dimension_numbers<[1], [0], [0], [1], [0, 0, 1, 1], [], []>} : vector<8x8xbf16>, vector<8x2048xbf16>, vector<8x2048xf32> -> vector<8x2048xf32>
    %31 = arith.addf %26, %30 : vector<8x2048xf32>
    %c6 = arith.constant 6 : index
    %c0_21 = arith.constant 0 : index
    %c0_22 = arith.constant 0 : index
    %32 = vector.load %arg3[%c6, %c0_21, %c0_22] : memref<9x8x8xbf16, #tpu.memory_space<vmem>>, vector<1x8x8xbf16>
    %33 = vector.shape_cast %32 : vector<1x8x8xbf16> to vector<8x8xbf16>
    %34 = vector.extract_strided_slice %2 {offsets = [0, 164], sizes = [8, 2048], strides = [1, 1]} : vector<8x2560xbf16> to vector<8x2048xbf16>
    %cst_23 = arith.constant dense<0.000000e+00> : vector<8x2048xf32>
    %35 = tpu.matmul %33, %34, %cst_23 {dimension_numbers = #tpu.dot_dimension_numbers<[1], [0], [0], [1], [0, 0, 1, 1], [], []>} : vector<8x8xbf16>, vector<8x2048xbf16>, vector<8x2048xf32> -> vector<8x2048xf32>
    %36 = arith.addf %31, %35 : vector<8x2048xf32>
    %c7 = arith.constant 7 : index
    %c0_24 = arith.constant 0 : index
    %c0_25 = arith.constant 0 : index
    %37 = vector.load %arg3[%c7, %c0_24, %c0_25] : memref<9x8x8xbf16, #tpu.memory_space<vmem>>, vector<1x8x8xbf16>
    %38 = vector.shape_cast %37 : vector<1x8x8xbf16> to vector<8x8xbf16>
    %39 = vector.extract_strided_slice %2 {offsets = [0, 165], sizes = [8, 2048], strides = [1, 1]} : vector<8x2560xbf16> to vector<8x2048xbf16>
    %cst_26 = arith.constant dense<0.000000e+00> : vector<8x2048xf32>
    %40 = tpu.matmul %38, %39, %cst_26 {dimension_numbers = #tpu.dot_dimension_numbers<[1], [0], [0], [1], [0, 0, 1, 1], [], []>} : vector<8x8xbf16>, vector<8x2048xbf16>, vector<8x2048xf32> -> vector<8x2048xf32>
    %41 = arith.addf %36, %40 : vector<8x2048xf32>
    %c8 = arith.constant 8 : index
    %c0_27 = arith.constant 0 : index
    %c0_28 = arith.constant 0 : index
    %42 = vector.load %arg3[%c8, %c0_27, %c0_28] : memref<9x8x8xbf16, #tpu.memory_space<vmem>>, vector<1x8x8xbf16>
    %43 = vector.shape_cast %42 : vector<1x8x8xbf16> to vector<8x8xbf16>
    %44 = vector.extract_strided_slice %2 {offsets = [0, 166], sizes = [8, 2048], strides = [1, 1]} : vector<8x2560xbf16> to vector<8x2048xbf16>
    %cst_29 = arith.constant dense<0.000000e+00> : vector<8x2048xf32>
    %45 = tpu.matmul %43, %44, %cst_29 {dimension_numbers = #tpu.dot_dimension_numbers<[1], [0], [0], [1], [0, 0, 1, 1], [], []>} : vector<8x8xbf16>, vector<8x2048xbf16>, vector<8x2048xf32> -> vector<8x2048xf32>
    %46 = arith.addf %41, %45 : vector<8x2048xf32>
    %c0_30 = arith.constant 0 : index
    %c0_31 = arith.constant 0 : index
    %47 = vector.load %arg4[%c0_30, %c0_31] : memref<8x1xf32, #tpu.memory_space<vmem>>, vector<8x1xf32>
    %48 = vector.broadcast %47 : vector<8x1xf32> to vector<8x2048xf32>
    %49 = arith.addf %46, %48 : vector<8x2048xf32>
    %c0_32 = arith.constant 0 : index
    %c0_33 = arith.constant 0 : index
    %50 = vector.load %arg5[%c0_32, %c0_33] : memref<8x2048xf32, #tpu.memory_space<vmem>>, vector<8x2048xf32>
    tpu.vector_store %arg5[%c0_32, %c0_33], %49 {strides = array<i32>} : memref<8x2048xf32, #tpu.memory_space<vmem>>, vector<8x2048xf32>,
    return
  }
  func.func @transform_0(%arg0: i32) -> (i32, i32) {
    %c0_i32 = arith.constant 0 : i32
    %c0_i32_0 = arith.constant 0 : i32
    return %c0_i32, %arg0 : i32, i32
  }
  func.func @transform_1(%arg0: i32) -> (i32, i32) {
    %c1_i32 = arith.constant 1 : i32
    %0 = arith.addi %arg0, %c1_i32 : i32
    %c4_i32 = arith.constant 4 : i32
    %1 = arith.muli %0, %c4_i32 : i32
    %c0_i32 = arith.constant 0 : i32
    %c0_i32_0 = arith.constant 0 : i32
    return %c0_i32, %1 : i32, i32
  }
  func.func @transform_2(%arg0: i32) -> (i32, i32, i32) {
    %c0_i32 = arith.constant 0 : i32
    %c0_i32_0 = arith.constant 0 : i32
    %c0_i32_1 = arith.constant 0 : i32
    %c0_i32_2 = arith.constant 0 : i32
    return %c0_i32, %c0_i32_0, %c0_i32_1 : i32, i32, i32
  }
  func.func @transform_3(%arg0: i32) -> (i32, i32) {
    %c0_i32 = arith.constant 0 : i32
    %c0_i32_0 = arith.constant 0 : i32
    %c0_i32_1 = arith.constant 0 : i32
    return %c0_i32, %c0_i32_0 : i32, i32
  }
  func.func @transform_4(%arg0: i32) -> (i32, i32) {
    %c0_i32 = arith.constant 0 : i32
    %c0_i32_0 = arith.constant 0 : i32
    return %c0_i32, %arg0 : i32, i32
  }
}

</mosaic_0001>

<bundles_post_ra>
// kernel: tpu_custom_call.1
= control target key start
LH: loop header
LB: loop body
LE: loop exit
PB: predicated region body
PF: predicated region fallthrough
CT: control target
= control target key end

     0   :  { %7 = vsyncpa [#allocation3], 0  ;;  %s633_s0 = inlined_call_operand.hbm [shape: f32[16,128], index: 0, kind: input, shape index: {}]   ;;  %s634_s1 = inlined_call_operand.hbm [shape: f32[8,128], index: 1, kind: input, shape index: {}]   ;;  %s635_s2 = inlined_call_operand.hbm [shape: f32[16,128], index: 2, kind: output, shape index: {}]  }
   0x1   :  { %9 = vsyncpa [#allocation3 + $0x1], 0 }
   0x2   :  { %10 = vsyncpa [#allocation6], 0 }
   0x3   :  { %11 = vsyncpa [#allocation4], 0 }
   0x4   :  { %13 = vsyncpa [#allocation4 + $0x1], 0  ;;  %s495_s9 = smov 0   ;;  %s497_s10 = smov 0  }
   0x5   :  { %s499_s11 = smov 0   ;;  %s501_s12 = smov 0  }
   0x6 LB: > { %s516_s13 = sadd.s32 4294967295, %s477_s12   ;;  %s276_s14 = sadd.s32 4294967294, %s477_s12   ;;  %s477_s12 = sphi %s501_s12, %s645_s12   ;;  %s473_s11 = sphi %s499_s11, %s644_s11   ;;  %s469_s10 = sphi %s497_s10, %s643_s10   ;;  %s465_s9 = sphi %s495_s9, %s642_s9  }
   0x7   : > { %p39_p0 = scmp.ne.s32.totalorder %s469_s10, %s465_s9  ;;  %p40_p1 = scmp.eq.s32.totalorder %s516_s13, 0 }
   0x8   : > { %p84_p2 = scmp.eq.s32.totalorder %s516_s13, 1  ;;  %p90_p3 = scmp.eq.s32.totalorder %s276_s14, 1 }
   0x9   : > { %p525_p4 = por %p40_p1, %p39_p0  ;;  %p277_p5 = scmp.ge.s32.totalorder %s477_s12, 1 }
   0xa   : > { %p530_p6 = por %p90_p3, %p39_p0  ;;  %p97_p7 = scmp.lt.s32.totalorder %s477_s12, 3 }
   0xb   : > { %s109_s19 = sshll.u32 %s634_s1, 4  ;;  %s479_s21 = smov [#allocation5]   ;;  %s110_s19 = int_to_ptr.hbm [resolvable:$true] %s109_s19 }
   0xc   : > { %p538_p8 = pnand %p277_p5, %p97_p7  ;;  %s111_s22 = sshll.u32 %s479_s21, 4  ;;  %s112_s22 = int_to_ptr.vmem [resolvable:$true] %s111_s22 }
   0xd   : > { %s548_s23 = sadd.s32 1, %s477_s12   ;;  %s26_s24 = sadd.s32 1, %s473_s11 }
   0xe   : > { %p298_p10 = pneg %p538_p8  ;;  %s23_s25 = ssub.s32 %s477_s12, %s548_s23 }
   0xf   : > { %p24_p12 = scmp.eq.s32.totalorder %s23_s25, 0  ;;  %p33_p13 = scmp.ne.s32.totalorder %s473_s11, %s469_s10 }
  0x10   : > { %p299_p11 = pnand %p298_p10, %p40_p1  ;;  %p34_p0 = scmp.eq.s32.totalorder %s477_s12, 0 }
  0x11   : > { %s557_s26 = scalar_select %p24_p12, %s473_s11, %s26_s24  }
  0x12   : > { %301 = dma.hbm_to_vmem [thread:$0]  (!%p299_p11), %s110_s19, 128, %s112_s22, [#allocation6]  }
  0x13   : > { %p561_p3 = por %p84_p2, %p33_p13  ;;  %p311_p5 = scmp.lt.s32.totalorder %s477_s12, 2 }
  0x14   : > { %s122_s28 = sand.u32 1, %s473_s11   ;;  %s281_s29 = sshll.u32 %s477_s12, 3 }
  0x15   : > { %p35_p7 = por %p34_p0, %p33_p13  ;;  %s280_s30 = sshll.u32 %s122_s28, 3 }
  0x16   : > { %s130_s5 = scalar_lea.hbm %s633_s0, %s281_s29  ;;  %s126_s7 = scalar_lea.vmem [#allocation2], %s280_s30 }
  0x17   : > { %s132_s6 = sshll.u32 %s130_s5, 4  ;;  %s134_s8 = sshll.u32 %s126_s7, 4  ;;  %s133_s6 = int_to_ptr.hbm [resolvable:$true] %s132_s6  ;;  %s135_s8 = int_to_ptr.vmem [resolvable:$true] %s134_s8 }
  0x18   : > { %p571_p10 = pnand %p311_p5, %p35_p7  ;;  %s123_s17 = scalar_lea.sflag [#allocation3], %s122_s28 }
  0x19   : > { %s377_s18 = sshra.s32 %s133_s6, 4  ;;  %s384_s24 = scalar_lea.hbm %s633_s0, 16  ;;  %s378_s18 = int_to_ptr.hbm [resolvable:$true] %s377_s18 }
  0x1a   : > { %s379_s19 = scalar_lea.hbm %s378_s18, 8  ;;  %p381_p11 = pneg %p571_p10 }
  0x1b   : > { %p380_p2 = scmp.ne.s32.totalorder %s378_s18, %s379_s19  ;;  %p385_p0 = scmp.lt.s32.totalorder %s378_s18, %s633_s0 }
  0x1c   : > { %p386_p5 = scmp.lt.s32.totalorder %s384_s24, %s379_s19 }
  0x1d   : > { %p382_p12 = pnand %p381_p11, %p380_p2 }
  0x1e   : > { %p387_p7 = por %p386_p5, %p385_p0 }
  0x1f   : > { %p383_p13 = pneg %p382_p12 }
  0x21   : > { %p388_p9 = pnand %p387_p7, %p383_p13 }
  0x23   : > { %391 = shalt.err (!%p388_p9)
}
  0x24   : > { %305 = dma.hbm_to_vmem [thread:$0]  (!%p571_p10), %s133_s6, 128, %s135_s8, %s123_s17  }
  0x25   : > { %143 = sbr.rel (%p538_p8) target bundleno = 60 (0x3c), region = 28  ;;  %s588_s28 = sand.u32 (!%p538_p8), 1, %s469_s10  }
  0x26   : > { %s283_s30 = sshll.u32 (!%p538_p8), %s588_s28, 3  ;;  %s146_s3 = scalar_lea.sflag (!%p538_p8), [#allocation3], %s588_s28 }
  0x27   : > { %s149_s4 = scalar_lea.vmem (!%p538_p8), [#allocation2], %s283_s30 }
  0x2a   : > { %452 = dma.done.wait (%p525_p4), %s146_s3, 128  }
  0x2b   : > { %454 = vsyncadd (%p525_p4), %s146_s3, 4294967168 }
  0x2c   : > { %456 = dma.done.wait (%p40_p1), [#allocation6], 128  }
  0x2d   : > { %458 = vsyncadd (%p40_p1), [#allocation6], 4294967168  ;;  %s287_s20 = sshll.u32 %s516_s13, 3  ;;  %s175_s8 = scalar_lea.vmem [#allocation7], %s283_s30  ;;  %v176_v0 = vld [vmem:[%s149_s4] sm:$0xff]  ;;  %v177_v1 = vld [vmem:[#allocation5] sm:$0xff] }
  0x2e   : > { %s191_s7 = scalar_lea.hbm %s635_s2, %s287_s20  ;;  %s193_s14 = sshll.u32 %s175_s8, 4  ;;  %v178_v2 = vadd.f32 %v177_v1, %v176_v0  ;;  %s194_s14 = int_to_ptr.vmem [resolvable:$true] %s193_s14 }
  0x2f   : > { %s195_s17 = sshll.u32 %s191_s7, 4  ;;  %s181_s15 = scalar_lea.sflag [#allocation4], %s588_s28  ;;  %s196_s17 = int_to_ptr.hbm [resolvable:$true] %s195_s17 }
  0x30   : > { %179 = vst [vmem:[%s175_s8] sm:$0xff] %v178_v2  ;;  %s421_s18 = sshra.s32 %s196_s17, 4  ;;  %s427_s22 = scalar_lea.hbm %s635_s2, 16  ;;  %s422_s18 = int_to_ptr.hbm [resolvable:$true] %s421_s18 }
  0x31   : > { %s423_s19 = scalar_lea.hbm %s422_s18, 8  ;;  %p428_p9 = scmp.lt.s32.totalorder %s422_s18, %s635_s2 }
  0x32   : > { %p424_p1 = scmp.ne.s32.totalorder %s422_s18, %s423_s19  ;;  %p429_p10 = scmp.lt.s32.totalorder %s427_s22, %s423_s19 }
  0x34   : > { %p425_p4 = pnand %p424_p1, %p561_p3  ;;  %p430_p2 = por %p429_p10, %p428_p9 }
  0x36   : > { %p426_p8 = pneg %p425_p4 }
  0x38   : > { %p431_p11 = pnand %p430_p2, %p426_p8 }
  0x3a   : > { %434 = shalt.err (!%p431_p11)
}
  0x3b   : > { %296 = dma.vmem_to_hbm [thread:$0]  (%p561_p3), %s194_s14, 128, %s196_s17, %s181_s15  }
  0x3c PF: > { %s207_s29 = sand.u32 1, %s465_s9   ;;  %p641_p12 = scmp.ge.s32.totalorder %s477_s12, 2 }
  0x3d   : > { %s208_s28 = scalar_lea.sflag [#allocation4], %s207_s29 }
  0x3e   : > { %p307_p13 = pnand %p641_p12, %p530_p6 }
  0x40   : > { %p308_p0 = pneg %p307_p13 }
  0x42   : > { %460 = dma.done.wait (%p308_p0), %s208_s28, 128  }
  0x43   : > { %462 = vsyncadd (%p308_p0), %s208_s28, 4294967168  ;;  %p16_p5 = scmp.ge.s32.totalorder %s548_s23, 4   ;;  %s642_s9 = smov %s469_s10 }
  0x44   : > { %s643_s10 = smov %s473_s11  ;;  %s644_s11 = smov %s557_s26 }
  0x45   : > { %s645_s12 = smov %s548_s23  ;;  %18 = sbr.rel (!%p16_p5) target bundleno = 6 (0x6), region = 77 }
  0x4a   :  { %214 = vsyncpa [#allocation3], 1 }
  0x4b   :  { %216 = vsyncpa [#allocation3 + $0x1], 1 }
  0x4c   :  { %217 = vsyncpa [#allocation6], 1 }
  0x4d   :  { %218 = vsyncpa [#allocation4], 1 }
  0x4e   :  { %220 = vsyncpa [#allocation4 + $0x1], 1 }

// kernel: tpu_custom_call.1
= control target key start
LH: loop header
LB: loop body
LE: loop exit
PB: predicated region body
PF: predicated region fallthrough
CT: control target
= control target key end

     0   :  { %9 = vsyncpa [#allocation3], 0  ;;  %s5358_s0 = inlined_call_operand.hbm [shape: bf16[8,8704], index: 0, kind: input, shape index: {}]   ;;  %s5359_s1 = inlined_call_operand.hbm [shape: bf16[8,8704], index: 1, kind: input, shape index: {}]   ;;  %s5360_s2 = inlined_call_operand.vmem [shape: bf16[9,8,8], index: 2, kind: input, shape index: {}]   ;;  %s5361_s3 = inlined_call_operand.vmem [shape: f32[8,1], index: 3, kind: input, shape index: {}]   ;;  %s5362_s4 = inlined_call_operand.hbm [shape: f32[8,8192], index: 4, kind: output, shape index: {}]  }
   0x1   :  { %11 = vsyncpa [#allocation3 + $0x1], 0 }
   0x2   :  { %12 = vsyncpa [#allocation6], 0 }
   0x3   :  { %14 = vsyncpa [#allocation6 + $0x1], 0 }
   0x4   :  { %15 = vsyncpa [#allocation4], 0 }
   0x5   :  { %17 = vsyncpa [#allocation4 + $0x1], 0  ;;  %s3811_s15 = smov 0   ;;  %s3813_s16 = smov 0  }
   0x6   :  { %s3815_s17 = smov 0   ;;  %s3817_s18 = smov 0  }
   0x7   :  { %s3819_s19 = smov 0   ;;  %s3821_s20 = smov 0  }
   0x8   :  { %s3823_s21 = smov 0  }
   0x9 LB: > { %5370 = sst [smem:[#allocation11_spill]] %s3762_s18  ;;  %s3845_s22 = sadd.s32 4294967295, %s3774_s21   ;;  %s3774_s21 = sphi %s3823_s21, %s5388_s21   ;;  %s3770_s20 = sphi %s3821_s20, %s5391_s20   ;;  %s3766_s19 = sphi %s3819_s19, %s5396_s19   ;;  %s3762_s18 = sphi %s3817_s18, %s5395_s18   ;;  %s3758_s17 = sphi %s3815_s17, %s5394_s17   ;;  %s3754_s16 = sphi %s3813_s16, %s5393_s16   ;;  %s3750_s15 = sphi %s3811_s15, %s5392_s15  }
   0xa   : > { %5371 = sst [smem:[#allocation12_spill]] %s3770_s20  ;;  %s3352_s23 = sadd.s32 4294967294, %s3774_s21  }
   0xb   : > { %s3849_s24 = sadd.s32 1, %s3774_s21   ;;  %s30_s25 = sadd.s32 1, %s3770_s20 }
   0xc   : > { %5372 = sst [smem:[#allocation13_spill]] %s3849_s24  ;;  %s27_s26 = ssub.s32 %s3774_s21, %s3849_s24 }
   0xd   : > { %p37_p0 = scmp.ne.s32.totalorder %s3770_s20, %s3766_s19  ;;  %p28_p1 = scmp.eq.s32.totalorder %s27_s26, 0 }
   0xe   : > { %p38_p2 = scmp.eq.s32.totalorder %s3774_s21, 0  ;;  %p43_p3 = scmp.ne.s32.totalorder %s3766_s19, %s3762_s18 }
   0xf   : > { %p44_p4 = scmp.eq.s32.totalorder %s3845_s22, 0  ;;  %s3527_s30 = sshll.u32 %s3774_s21, 2 }
  0x10   : > { %s3861_s27 = scalar_select %p28_p1, %s3770_s20, %s30_s25  }
  0x11   : > { %p3868_p5 = por %p38_p2, %p37_p0  ;;  %p3877_p6 = por %p44_p4, %p43_p3 }
  0x12   : > { %5373 = sst [smem:[#allocation14_spill]] %s3861_s27  ;;  %s60_s5 = sadd.s32 1, %s3758_s17 }
  0x13   : > { %s3528_s6 = sadd.s32 4, %s3527_s30  ;;  %p67_p7 = scmp.ne.s32.totalorder %s3758_s17, %s3754_s16 }
  0x14   : > { %s3530_s7 = sadd.s32 4, %s3528_s6  ;;  %p73_p8 = scmp.ne.s32.totalorder %s3754_s16, %s3750_s15 }
  0x15   : > { %s57_s8 = ssub.s32 %s3528_s6, %s3530_s7  ;;  %p3888_p9 = por %p67_p7, %p38_p2 }
  0x16   : > { %p58_p10 = scmp.eq.s32.totalorder %s57_s8, 0  ;;  %p3894_p11 = por %p73_p8, %p44_p4 }
  0x17   : > { %p139_p12 = scmp.eq.s32.totalorder %s3845_s22, 3  ;;  %p145_p13 = scmp.eq.s32.totalorder %s3352_s23, 3 }
  0x18   : > { %s3900_s11 = scalar_select %p58_p10, %s3758_s17, %s60_s5  }
  0x19   : > { %p3905_p1 = por %p139_p12, %p37_p0  ;;  %p3912_p2 = por %p145_p13, %p43_p3 }
  0x1a   : > { %5378 = sst [smem:[#allocation15_spill]] %s3900_s11  ;;  %p3356_p7 = scmp.ge.s32.totalorder %s3774_s21, 4 }
  0x1b   : > { %s5379_s12 = scalar_select %p3905_p1, 1, 0 }
  0x1c   : > { %s5380_s13 = scalar_select %p3912_p2, 1, 0 }
  0x1d   : > { %167 = sbr.rel (%p3356_p7) target bundleno = 86 (0x56), region = 24 }
  0x1e   : > { %5381 = sst [smem:[#allocation16_spill]] %s5380_s13 }
  0x22   : > { %170 = sbr.rel (!%p3868_p5) target bundleno = 70 (0x46), region = 28  ;;  %s171_s14 = sand.u32 (%p3868_p5), 1, %s3770_s20  }
  0x23   : > { %s3358_s15 = sshll.u32 (%p3868_p5), %s3774_s21, 4  ;;  %s3357_s23 = sshll.u32 (%p3868_p5), %s171_s14, 6 }
  0x24   : > { %s177_s25 = ssub.s32 (%p3868_p5), 68, %s3358_s15  ;;  %s3924_s6 = scalar_lea.sflag (%p3868_p5), [#allocation3], %s171_s14 }
  0x25   : > { %p178_p0 = scmp.lt.s32.totalorder (%p3868_p5), %s177_s25, 16  ;;  %s175_s7 = scalar_lea.vmem (%p3868_p5), [#allocation2], %s3357_s23 }
  0x27   : > { %s5398_s25 = smov (!%p178_p0, %s177_s25), 16 }
  0x28   : > { %s3359_s26 = sshll.u32 %s5398_s25, 2 }
  0x29   : > { %s181_s30 = ssub.s32 64, %s3359_s26 }
  0x2a   : > { %s182_s5 = sshll.u32 %s181_s30, 4 }
  0x2b   : > { %183 = vsyncadd %s3924_s6, %s182_s5  ;;  %p3927_p3 = scmp.ne.s32.totalorder %s3359_s26, 0  ;;  %s3531_s8 = sshll.u32 %s3774_s21, 6 }
  0x2c   : > { %s186_s20 = scalar_lea.hbm %s5358_s0, %s3531_s8  ;;  %s5367_s11 = sshll.u32 %s5398_s25, 6 }
  0x2d   : > { %s189_s30 = sshll.u32 %s186_s20, 4  ;;  %s3936_s14 = sshll.u32 %s175_s7, 4  ;;  %s190_s30 = int_to_ptr.hbm [resolvable:$true] %s189_s30  ;;  %s192_s14 = int_to_ptr.vmem [resolvable:$true] %s3936_s14 }
  0x2e   : > { %s3613_s23 = sshra.s32 %s190_s30, 4  ;;  %s3615_s26 = sshrl.u32 %s5367_s11, 4  ;;  %s3614_s23 = int_to_ptr.hbm [resolvable:$true] %s3613_s23 }
  0x2f   : > { %s3620_s5 = scalar_lea.hbm %s3614_s23, %s3615_s26  ;;  %s3624_s27 = scalar_lea.hbm %s5358_s0, 272 }
  0x30   : > { %p3621_p4 = scmp.ne.s32.totalorder %s3614_s23, %s3620_s5  ;;  %p3625_p10 = scmp.lt.s32.totalorder %s3614_s23, %s5358_s0 }
  0x31   : > { %p3626_p12 = scmp.lt.s32.totalorder %s3624_s27, %s3620_s5 }
  0x32   : > { %p3622_p5 = pnand %p3621_p4, %p3927_p3 }
  0x33   : > { %p3627_p13 = por %p3626_p12, %p3625_p10 }
  0x34   : > { %p3623_p8 = pneg %p3622_p5 }
  0x36   : > { %p3628_p7 = pnand %p3627_p13, %p3623_p8 }
  0x38   : > { %3631 = shalt.err (!%p3628_p7)
}
  0x39   : > { %s3632_s7 = sshra.s32 %s192_s14, 4  ;;  %s3776_s11 = smov [#allocation2]   ;;  %s3633_s7 = int_to_ptr.vmem [resolvable:$true] %s3632_s7 }
  0x3a   : > { %s3639_s15 = scalar_lea.vmem %s3633_s7, %s3615_s26  ;;  %s3643_s18 = scalar_lea.vmem %s3776_s11, 128 }
  0x3b   : > { %p3640_p0 = scmp.ne.s32.totalorder %s3633_s7, %s3639_s15  ;;  %p3645_p2 = scmp.lt.s32.totalorder %s3643_s18, %s3639_s15 }
  0x3d   : > { %p3641_p4 = pnand %p3640_p0, %p3927_p3 }
  0x3f   : > { %p3642_p5 = pneg %p3641_p4 }
  0x41   : > { %p3647_p1 = pnand %p3645_p2, %p3642_p5 }
  0x43   : > { %3650 = shalt.err (!%p3647_p1)
}
  0x44   : > { %s5383_s24 = sshll.u32 %s5398_s25, 6 }
  0x45   : > { %194 = dma.hbm_to_vmem [thread:$0]  (%p3927_p3), %s190_s30, %s5383_s24, %s192_s14, %s3924_s6  }
  0x46 PF: > { %s198_s13 = sand.u32 1, %s3758_s17   ;;  %s3365_s23 = sshll.u32 %s3774_s21, 6 }
  0x47   : > { %s3364_s26 = sshll.u32 %s198_s13, 4  ;;  %s3294_s11 = scalar_lea.hbm %s5359_s1, %s3365_s23 }
  0x48   : > { %s3295_s18 = scalar_lea.hbm %s3294_s11, 64  ;;  %s202_s8 = scalar_lea.vmem [#allocation5], %s3364_s26 }
  0x49   : > { %s213_s20 = sshll.u32 %s202_s8, 4  ;;  %s211_s7 = sshll.u32 %s3295_s18, 4  ;;  %s214_s20 = int_to_ptr.vmem [resolvable:$true] %s213_s20  ;;  %s212_s7 = int_to_ptr.hbm [resolvable:$true] %s211_s7 }
  0x4a   : > { %s199_s28 = scalar_lea.sflag [#allocation6], %s198_s13  ;;  %s3652_s25 = sshra.s32 %s212_s7, 4  ;;  %s3653_s25 = int_to_ptr.hbm [resolvable:$true] %s3652_s25 }
  0x4b   : > { %s3654_s6 = scalar_lea.hbm %s3653_s25, 16  ;;  %s3658_s15 = scalar_lea.hbm %s5359_s1, 272 }
  0x4c   : > { %p3655_p1 = scmp.ne.s32.totalorder %s3653_s25, %s3654_s6  ;;  %p3659_p8 = scmp.lt.s32.totalorder %s3653_s25, %s5359_s1 }
  0x4d   : > { %p3660_p10 = scmp.lt.s32.totalorder %s3658_s15, %s3654_s6 }
  0x4e   : > { %p3656_p2 = pnand %p3655_p1, %p3888_p9 }
  0x4f   : > { %p3661_p12 = por %p3660_p10, %p3659_p8 }
  0x50   : > { %p3657_p3 = pneg %p3656_p2 }
  0x52   : > { %p3662_p13 = pnand %p3661_p12, %p3657_p3 }
  0x54   : > { %3665 = shalt.err (!%p3662_p13)
}
  0x55   : > { %3535 = dma.hbm_to_vmem [thread:$0]  (%p3888_p9), %s212_s7, 256, %s214_s20, %s199_s28  }
  0x56 PF: > { %p3366_p7 = scmp.ge.s32.totalorder %s3774_s21, 1  ;;  %p218_p0 = scmp.lt.s32.totalorder %s3774_s21, 5 }
  0x58   : > { %p219_p4 = pnand %p3366_p7, %p218_p0 }
  0x59   : > { %s3974_s13 = sand.u32 (!%p219_p4), 1, %s3766_s19  }
  0x5a   : > { %222 = sbr.rel (%p219_p4) target bundleno = 934 (0x3a6), region = 36  ;;  %s3367_s26 = sshll.u32 (!%p219_p4), %s3974_s13, 6 }
  0x5b   : > { %s225_s5 = scalar_lea.sflag (!%p219_p4), [#allocation3], %s3974_s13  ;;  %s3978_s27 = scalar_lea.vmem (!%p219_p4), [#allocation2], %s3367_s26 }
  0x5f   : > { %3737 = dma.done.wait (%p3877_p6), %s225_s5, 1024  }
  0x60   : > { %3739 = vsyncadd (%p3877_p6), %s225_s5, 4294966272  ;;  %s234_s9 = sand.u32 1, %s3754_s16  }
  0x61   : > { %s3985_s11 = sshll.u32 %s234_s9, 4  ;;  %s235_s18 = scalar_lea.sflag [#allocation6], %s234_s9 }
  0x62   : > { %s238_s8 = scalar_lea.vmem [#allocation5], %s3985_s11 }
  0x63   : > { %3741 = dma.done.wait (%p3894_p11), %s235_s18, 256  }
  0x64   : > { %3743 = vsyncadd (%p3894_p11), %s235_s18, 4294967040  ;;  %v281_v0 = vld [vmem:[%s3978_s27 + $0x10] sm:$0xff]  ;;  %v280_v1 = vld [vmem:[%s3978_s27 + $0x8] sm:$0xff]  ;;  %s3777_s29 = smov 127   ;;  %s3778_s10 = smov 126   ;;  %vm370_vm0 = vcmask 1039360  }
  0x65   : > { %v279_v2 = vld [vmem:[%s3978_s27] sm:$0xff]  ;;  %v300_v3 = vunpack.c.l.b16 %v281_v0  ;;  %v298_v4 = vunpack.c.l.b16 %v280_v1  ;;  %v299_v9 = vunpack.c.h.b16 %v280_v1  ;;  %v282_v11 = vld [vmem:[%s3978_s27 + $0x18] sm:$0xff]  ;;  %v301_v19 = vunpack.c.h.b16 %v281_v0  ;;  %v284_v22 = vld [vmem:[%s3978_s27 + $0x28] sm:$0xff]  ;;  %s3779_s20 = smov 46   ;;  %s3780_s25 = smov 45  }
  0x66   : > { %v297_v5 = vunpack.c.h.b16 %v279_v2  ;;  %v296_v10 = vunpack.c.l.b16 %v279_v2  ;;  %v302_v12 = vunpack.c.l.b16 %v282_v11  ;;  %v283_v16 = vld [vmem:[%s3978_s27 + $0x20] sm:$0xff]  ;;  %v303_v17 = vunpack.c.h.b16 %v282_v11  ;;  %v285_v26 = vld [vmem:[%s3978_s27 + $0x30] sm:$0xff]  ;;  %v286_v30 = vld [vmem:[%s3978_s27 + $0x38] sm:$0xff]  ;;  %s3781_s6 = smov 44   ;;  %s3782_s15 = smov 92  }
  0x67   : > { %v3995_v6 = vpack.c.b16 %v300_v3, %v300_v3  ;;  %v3997_v7 = vpack.c.b16 %v298_v4, %v298_v4  ;;  %v4008_v13 = vpack.c.b16 %v299_v9, %v299_v9  ;;  %v304_v18 = vunpack.c.l.b16 %v283_v16  ;;  %v287_v37 = vld [vmem:[%s238_s8] sm:$0xff]  ;;  %s3783_s26 = smov 91   ;;  %s3784_s9 = smov 90  }
  0x68   : > { %v3999_v8 = vpack.c.b16 %v297_v5, %v297_v5  ;;  %v4010_v14 = vpack.c.b16 %v296_v10, %v296_v10  ;;  %v4012_v15 = vpack.c.b16 %v302_v12, %v302_v12  ;;  %v4021_v20 = vpack.c.b16 %v303_v17, %v303_v17  ;;  %v4116_v52 = vld [vmem:[%s5360_s2 + $0x4] sm:$0xf]  ;;  %s3532_s23 = sshll.u32 %s3845_s22, 7  ;;  %s3242_s18 = scalar_lea.sflag [#allocation4], %s3974_s13 }
  0x69   : > { %344 = vrot.lane.b32.xlu1 %v3995_v6, %s3777_s29  ;;  %340 = vrot.lane.b32.xlu0 %v3997_v7, %s3777_s29  ;;  %v4023_v21 = vpack.c.b16 %v304_v18, %v304_v18  ;;  %v4026_v23 = vpack.c.b16 %v301_v19, %v301_v19  ;;  %v306_v24 = vunpack.c.l.b16 %v284_v22  ;;  %v307_v25 = vunpack.c.h.b16 %v284_v22  ;;  %s3253_s27 = scalar_lea.hbm %s5362_s4, %s3532_s23  ;;  %p5384_p9 = scmp.ne.s32.totalorder %s5379_s12, 0 }
  0x6a   : > { %338 = vrot.lane.b32.xlu2 %v3999_v8, %s3777_s29  ;;  %v308_v27 = vunpack.c.l.b16 %v285_v26  ;;  %v305_v32 = vunpack.c.h.b16 %v283_v16  ;;  %v310_v33 = vunpack.c.l.b16 %v286_v30  ;;  %v311_v34 = vunpack.c.h.b16 %v286_v30 }
  0x6b   : > { %v4035_v28 = vpack.c.b16 %v306_v24, %v306_v24  ;;  %v4037_v29 = vpack.c.b16 %v307_v25, %v307_v25  ;;  %v309_v39 = vunpack.c.h.b16 %v285_v26  ;;  %v329_v40 = vunpack.c.l.b16 %v287_v37 }
  0x6c   : > { %v4040_v31 = vpack.c.b16 %v308_v27, %v308_v27  ;;  %v4048_v35 = vpack.c.b16 %v305_v32, %v305_v32  ;;  %v4050_v36 = vpack.c.b16 %v310_v33, %v310_v33  ;;  %v4054_v38 = vpack.c.b16 %v311_v34, %v311_v34 }
  0x6d   : > { %v4062_v41 = vpack.c.b16 %v309_v39, %v309_v39  ;;  %v4064_v42 = vpack.c.b16 %v329_v40, %v329_v40  ;;  %vm391_vm1 = vcmask 1043456   ;;  %vm387_vm2 = vcmask 64512  }
  0x6e   : > { %vm943_vm3 = vcmask 1031168   ;;  %vm1271_vm4 = vcmask 375808   ;;  %vm1599_vm5 = vcmask 367616   ;;  %vm1927_vm6 = vcmask 359424  }
  0x6f   : > { %vm2255_vm7 = vcmask 752640   ;;  %vm2583_vm8 = vcmask 744448   ;;  %vm2911_vm9 = vcmask 736256  }
  0x71   : > { %342 = vrot.lane.b32.xlu0 %v4008_v13, %s3777_s29  ;;  %336 = vrot.lane.b32.xlu1 %v4010_v14, %s3777_s29 }
  0x72   : > { %348 = vrot.lane.b32.xlu2 %v4012_v15, %s3777_s29 }
  0x79   : > { %350 = vrot.lane.b32.xlu0 %v4021_v20, %s3777_s29  ;;  %352 = vrot.lane.b32.xlu1 %v4023_v21, %s3777_s29 }
  0x7a   : > { %346 = vrot.lane.b32.xlu2 %v4026_v23, %s3777_s29 }
  0x81   : > { %356 = vrot.lane.b32.xlu0 %v4035_v28, %s3777_s29  ;;  %358 = vrot.lane.b32.xlu1 %v4037_v29, %s3777_s29 }
  0x82   : > { %360 = vrot.lane.b32.xlu2 %v4040_v31, %s3777_s29 }
  0x89   : > { %354 = vrot.lane.b32.xlu0 %v4048_v35, %s3777_s29  ;;  %364 = vrot.lane.b32.xlu1 %v4050_v36, %s3777_s29 }
  0x8a   : > { %366 = vrot.lane.b32.xlu2 %v4054_v38, %s3777_s29 }
  0x91   : > { %362 = vrot.lane.b32.xlu1 %v4062_v41, %s3777_s29  ;;  %368 = vrot.lane.b32.xlu0 %v4064_v42, %s3777_s29 }
  0x92   : > { %913 = vrot.lane.b32.xlu2 %v3997_v7, %s3778_s10 }
  0x99   : > { %917 = vrot.lane.b32.xlu1 %v3995_v6, %s3778_s10  ;;  %915 = vrot.lane.b32.xlu0 %v4008_v13, %s3778_s10 }
  0x9a   : > { %909 = vrot.lane.b32.xlu2 %v4010_v14, %s3778_s10 }
  0xa1   : > { %921 = vrot.lane.b32.xlu1 %v4012_v15, %s3778_s10  ;;  %911 = vrot.lane.b32.xlu0 %v3999_v8, %s3778_s10 }
  0xa2   : > { %923 = vrot.lane.b32.xlu2 %v4021_v20, %s3778_s10 }
  0xa9   : > { %919 = vrot.lane.b32.xlu1 %v4026_v23, %s3778_s10  ;;  %925 = vrot.lane.b32.xlu0 %v4023_v21, %s3778_s10 }
  0xaa   : > { %929 = vrot.lane.b32.xlu2 %v4035_v28, %s3778_s10 }
  0xb1   : > { %931 = vrot.lane.b32.xlu0 %v4037_v29, %s3778_s10  ;;  %933 = vrot.lane.b32.xlu1 %v4040_v31, %s3778_s10 }
  0xb2   : > { %927 = vrot.lane.b32.xlu2 %v4048_v35, %s3778_s10 }
  0xb9   : > { %937 = vrot.lane.b32.xlu0 %v4050_v36, %s3778_s10  ;;  %939 = vrot.lane.b32.xlu1 %v4054_v38, %s3778_s10 }
  0xba   : > { %941 = vrot.lane.b32.xlu2 %v4064_v42, %s3778_s10 }
  0xc1   : > { %935 = vrot.lane.b32.xlu0 %v4062_v41, %s3778_s10  ;;  %1241 = vrot.lane.b32.xlu1 %v3997_v7, %s3779_s20 }
  0xc2   : > { %1243 = vrot.lane.b32.xlu2 %v4008_v13, %s3779_s20 }
  0xc4   : > { %v339_v43 = vpop.permute.xlu2 %338 }
  0xc9   : > { %1245 = vrot.lane.b32.xlu0 %v3995_v6, %s3779_s20  ;;  %1237 = vrot.lane.b32.xlu1 %v4010_v14, %s3779_s20 }
  0xca   : > { %1239 = vrot.lane.b32.xlu2 %v3999_v8, %s3779_s20 }
  0xcc   : > { %v349_v44 = vpop.permute.xlu2 %348 }
  0xd1   : > { %1249 = vrot.lane.b32.xlu0 %v4012_v15, %s3779_s20  ;;  %1251 = vrot.lane.b32.xlu1 %v4021_v20, %s3779_s20 }
  0xd2   : > { %1253 = vrot.lane.b32.xlu2 %v4023_v21, %s3779_s20 }
  0xd4   : > { %v347_v45 = vpop.permute.xlu2 %346 }
  0xd5   : > { %v376_v46 = vsel %vm370_vm0, %v347_v45, %v349_v44 }
  0xd6   : > { %v408_v50 = vsel %vm391_vm1, %v376_v46, 0 }
  0xd9   : > { %1247 = vrot.lane.b32.xlu0 %v4026_v23, %s3779_s20  ;;  %1257 = vrot.lane.b32.xlu1 %v4035_v28, %s3779_s20 }
  0xda   : > { %1259 = vrot.lane.b32.xlu2 %v4037_v29, %s3779_s20 }
  0xdb   : > { %v345_v47 = vpop.permute.xlu1 %344  ;;  %v341_v48 = vpop.permute.xlu0 %340 }
  0xdc   : > { %v372_v49 = vsel %vm370_vm0, %v339_v43, %v341_v48  ;;  %v375_v55 = vsel %vm370_vm0, %v345_v47, %v347_v45  ;;  %v361_v5 = vpop.permute.xlu2 %360 }
  0xdd   : > { %v396_v51 = vsel %vm391_vm1, %v372_v49, 0  ;;  %v405_v62 = vsel %vm391_vm1, %v375_v55, 0  ;;  %v652_v49 = vsel %vm391_vm1, %v4010_v14, 0  ;;  %v4245_v55 = vld [vmem:[%s5360_s2] sm:$0xf] }
  0xde   : > { %460 = vmatpush.bf16.msra.mxu1 %v396_v51  ;;  %v670_v51 = vsel %vm391_vm1, %v4012_v15, 0 }
  0xe1   : > { %3372 = vmatmul.msk.bf16.vlgmr.msra.gmra.mxu1 %vm387_vm2, %v4116_v52  ;;  %1255 = vrot.lane.b32.xlu1 %v4048_v35, %s3779_s20 }
  0xe2   : > { %512 = vmatpush.bf16.msrb.mxu1 %v408_v50  ;;  %1261 = vrot.lane.b32.xlu0 %v4040_v31, %s3779_s20  ;;  %v667_v50 = vsel %vm391_vm1, %v4026_v23, 0 }
  0xe3   : > { %1265 = vrot.lane.b32.xlu2 %v4050_v36, %s3779_s20  ;;  %v343_v53 = vpop.permute.xlu0 %342  ;;  %v337_v54 = vpop.permute.xlu1 %336 }
  0xe4   : > { %v371_v56 = vsel %vm370_vm0, %v337_v54, %v339_v43  ;;  %v373_v57 = vsel %vm370_vm0, %v341_v48, %v343_v53  ;;  %v374_v58 = vsel %vm370_vm0, %v343_v53, %v345_v47  ;;  %v367_v18 = vpop.permute.xlu2 %366  ;;  %v655_v43 = vsel %vm391_vm1, %v3999_v8, 0 }
  0xe5   : > { %v393_v59 = vsel %vm391_vm1, %v371_v56, 0  ;;  %v399_v60 = vsel %vm391_vm1, %v373_v57, 0  ;;  %v402_v61 = vsel %vm391_vm1, %v374_v58, 0  ;;  %v658_v47 = vsel %vm391_vm1, %v3997_v7, 0 }
  0xe6   : > { %447 = vmatpush.bf16.msra.mxu0 %v393_v59  ;;  %473 = vmatpush.bf16.msra.mxu2 %v399_v60  ;;  %v661_v48 = vsel %vm391_vm1, %v4008_v13, 0  ;;  %v673_v53 = vsel %vm391_vm1, %v4021_v20, 0  ;;  %v664_v54 = vsel %vm391_vm1, %v3995_v6, 0  ;;  %v682_v56 = vsel %vm391_vm1, %v4035_v28, 0 }
  0xe7   : > { %486 = vmatpush.bf16.msra.mxu3 %v402_v61  ;;  %v685_v57 = vsel %vm391_vm1, %v4037_v29, 0  ;;  %v676_v58 = vsel %vm391_vm1, %v4023_v21, 0 }
  0xe9   : > { %3373 = vmatmul.msk.bf16.vlgmr.msra.gmra.mxu2 %vm387_vm2, %v4116_v52  ;;  %3371 = vmatmul.msk.bf16.vlgmr.msra.gmra.mxu0 %vm387_vm2, %v4116_v52 }
  0xea   : > { %499 = vmatpush.bf16.msrb.mxu0 %v405_v62  ;;  %3374 = vmatmul.msk.bf16.vlgmr.msra.gmra.mxu3 %vm387_vm2, %v4116_v52  ;;  %v694_v62 = vsel %vm391_vm1, %v4050_v36, 0 }
  0xeb   : > { %1267 = vrot.lane.b32.xlu0 %v4054_v38, %s3779_s20  ;;  %v351_v63 = vpop.permute.xlu0 %350  ;;  %v353_v0 = vpop.permute.xlu1 %352  ;;  %1269 = vrot.lane.b32.xlu1 %v4064_v42, %s3779_s20 }
  0xec   : > { %1263 = vrot.lane.b32.xlu2 %v4062_v41, %s3779_s20  ;;  %v377_v1 = vsel %vm370_vm0, %v349_v44, %v351_v63  ;;  %v378_v2 = vsel %vm370_vm0, %v351_v63, %v353_v0  ;;  %v914_v60 = vpop.permute.xlu2 %913  ;;  %v697_v63 = vsel %vm391_vm1, %v4054_v38, 0  ;;  %s3700_s20 = scalar_lea.hbm %s5362_s4, 512 }
  0xed   : > { %v411_v3 = vsel %vm391_vm1, %v377_v1, 0  ;;  %v414_v4 = vsel %vm391_vm1, %v378_v2, 0 }
  0xee   : > { %525 = vmatpush.bf16.msrb.mxu2 %v411_v3  ;;  %538 = vmatpush.bf16.msrb.mxu3 %v414_v4 }
  0xf1   : > { %3376 = vmatmul.msk.bf16.vlgmr.msrb.gmra.mxu1 %vm387_vm2, %v4116_v52 }
  0xf3   : > { %1569 = vrot.lane.b32.xlu0 %v3997_v7, %s3780_s25  ;;  %v357_v9 = vpop.permute.xlu0 %356  ;;  %v359_v10 = vpop.permute.xlu1 %358  ;;  %1571 = vrot.lane.b32.xlu1 %v4008_v13, %s3780_s25 }
  0xf4   : > { %1573 = vrot.lane.b32.xlu2 %v3995_v6, %s3780_s25  ;;  %v381_v11 = vsel %vm370_vm0, %v357_v9, %v359_v10  ;;  %v382_v12 = vsel %vm370_vm0, %v359_v10, %v361_v5  ;;  %v910_v3 = vpop.permute.xlu2 %909 }
  0xf5   : > { %v423_v16 = vsel %vm391_vm1, %v381_v11, 0  ;;  %v426_v17 = vsel %vm391_vm1, %v382_v12, 0 }
  0xf6   : > { %577 = vmatpush.bf16.msra.mxu2 %v423_v16  ;;  %590 = vmatpush.bf16.msra.mxu3 %v426_v17 }
  0xf9   : > { %3377 = vmatmul.msk.bf16.vlgmr.msrb.gmra.mxu2 %vm387_vm2, %v4116_v52  ;;  %3375 = vmatmul.msk.bf16.vlgmr.msrb.gmra.mxu0 %vm387_vm2, %v4116_v52 }
  0xfa   : > { %3378 = vmatmul.msk.bf16.vlgmr.msrb.gmra.mxu3 %vm387_vm2, %v4116_v52 }
  0xfb   : > { %1565 = vrot.lane.b32.xlu0 %v4010_v14, %s3780_s25  ;;  %v355_v19 = vpop.permute.xlu0 %354  ;;  %v365_v22 = vpop.permute.xlu1 %364  ;;  %1567 = vrot.lane.b32.xlu1 %v3999_v8, %s3780_s25 }
  0xfc   : > { %1577 = vrot.lane.b32.xlu2 %v4012_v15, %s3780_s25  ;;  %v379_v24 = vsel %vm370_vm0, %v353_v0, %v355_v19  ;;  %v380_v25 = vsel %vm370_vm0, %v355_v19, %v357_v9  ;;  %v385_v26 = vsel %vm370_vm0, %v365_v22, %v367_v18  ;;  %v688_v0 = vsel %vm391_vm1, %v4040_v31, 0  ;;  %v924_v16 = vpop.permute.xlu2 %923 }
  0xfd   : > { %v417_v27 = vsel %vm391_vm1, %v379_v24, 0  ;;  %v420_v30 = vsel %vm391_vm1, %v380_v25, 0  ;;  %v435_v32 = vsel %vm391_vm1, %v385_v26, 0 }
  0xfe   : > { %551 = vmatpush.bf16.msra.mxu0 %v417_v27  ;;  %564 = vmatpush.bf16.msra.mxu1 %v420_v30 }
  0xff   : > { %629 = vmatpush.bf16.msrb.mxu2 %v435_v32 }
 0x101   : > { %3380 = vmatmul.msk.bf16.vlgmr.msra.gmra.mxu1 %vm387_vm2, %v4116_v52 }
 0x103   : > { %1579 = vrot.lane.b32.xlu0 %v4021_v20, %s3780_s25  ;;  %v363_v33 = vpop.permute.xlu1 %362  ;;  %v369_v34 = vpop.permute.xlu0 %368  ;;  %1581 = vrot.lane.b32.xlu1 %v4023_v21, %s3780_s25 }
 0x104   : > { %1575 = vrot.lane.b32.xlu2 %v4026_v23, %s3780_s25  ;;  %v383_v37 = vsel %vm370_vm0, %v361_v5, %v363_v33  ;;  %v384_v39 = vsel %vm370_vm0, %v363_v33, %v365_v22  ;;  %v386_v40 = vsel %vm370_vm0, %v367_v18, %v369_v34  ;;  %v930_v26 = vpop.permute.xlu2 %929 }
 0x105   : > { %v429_v44 = vsel %vm391_vm1, %v383_v37, 0  ;;  %v432_v45 = vsel %vm391_vm1, %v384_v39, 0  ;;  %v438_v46 = vsel %vm391_vm1, %v386_v40, 0 }
 0x106   : > { %603 = vmatpush.bf16.msrb.mxu0 %v429_v44  ;;  %616 = vmatpush.bf16.msrb.mxu1 %v432_v45  ;;  %v4355_v45 = vld [vmem:[%s5360_s2 + $0x8] sm:$0xf] }
 0x107   : > { %642 = vmatpush.bf16.msrb.mxu3 %v438_v46 }
 0x109   : > { %3379 = vmatmul.msk.bf16.vlgmr.msra.gmra.mxu0 %vm387_vm2, %v4116_v52  ;;  %3381 = vmatmul.msk.bf16.vlgmr.msra.gmra.mxu2 %vm387_vm2, %v4116_v52 }
 0x10a   : > { %719 = vmatpush.bf16.msra.mxu1 %v655_v43  ;;  %3382 = vmatmul.msk.bf16.vlgmr.msra.gmra.mxu3 %vm387_vm2, %v4116_v52 }
 0x10b   : > { %732 = vmatpush.bf16.msra.mxu2 %v658_v47  ;;  %745 = vmatpush.bf16.msra.mxu3 %v661_v48  ;;  %v916_v59 = vpop.permute.xlu0 %915  ;;  %v918_v61 = vpop.permute.xlu1 %917 }
 0x10c   : > { %706 = vmatpush.bf16.msra.mxu0 %v652_v49  ;;  %1585 = vrot.lane.b32.xlu0 %v4035_v28, %s3780_s25  ;;  %v946_v9 = vsel %vm943_vm3, %v914_v60, %v916_v59  ;;  %v947_v10 = vsel %vm943_vm3, %v916_v59, %v918_v61  ;;  %v928_v40 = vpop.permute.xlu2 %927 }
 0x10d   : > { %1587 = vrot.lane.b32.xlu1 %v4037_v29, %s3780_s25  ;;  %1589 = vrot.lane.b32.xlu2 %v4040_v31, %s3780_s25  ;;  %v970_v12 = vsel %vm391_vm1, %v946_v9, 0  ;;  %v973_v17 = vsel %vm391_vm1, %v947_v10, 0  ;;  %v953_v43 = vsel %vm943_vm3, %v928_v40, %v930_v26 }
 0x10e   : > { %v991_v46 = vsel %vm391_vm1, %v953_v43, 0 }
 0x111   : > { %3384 = vmatmul.msk.bf16.vlgmr.msrb.gmra.mxu1 %vm387_vm2, %v4116_v52 }
 0x112   : > { %771 = vmatpush.bf16.msrb.mxu1 %v667_v50 }
 0x113   : > { %v912_v1 = vpop.permute.xlu0 %911  ;;  %v922_v5 = vpop.permute.xlu1 %921 }
 0x114   : > { %1583 = vrot.lane.b32.xlu0 %v4048_v35, %s3780_s25  ;;  %v945_v2 = vsel %vm943_vm3, %v912_v1, %v914_v60  ;;  %v944_v11 = vsel %vm943_vm3, %v910_v3, %v912_v1  ;;  %v950_v30 = vsel %vm943_vm3, %v922_v5, %v924_v16 }
 0x115   : > { %1593 = vrot.lane.b32.xlu1 %v4050_v36, %s3780_s25  ;;  %1595 = vrot.lane.b32.xlu2 %v4054_v38, %s3780_s25  ;;  %v967_v4 = vsel %vm391_vm1, %v945_v2, 0  ;;  %v964_v18 = vsel %vm391_vm1, %v944_v11, 0  ;;  %v982_v37 = vsel %vm391_vm1, %v950_v30, 0 }
 0x119   : > { %3383 = vmatmul.msk.bf16.vlgmr.msrb.gmra.mxu0 %vm387_vm2, %v4116_v52  ;;  %3385 = vmatmul.msk.bf16.vlgmr.msrb.gmra.mxu2 %vm387_vm2, %v4116_v52 }
 0x11a   : > { %3386 = vmatmul.msk.bf16.vlgmr.msrb.gmra.mxu3 %vm387_vm2, %v4116_v52  ;;  %784 = vmatpush.bf16.msrb.mxu2 %v670_v51  ;;  %v679_v52 = vsel %vm391_vm1, %v4048_v35, 0 }
 0x11b   : > { %797 = vmatpush.bf16.msrb.mxu3 %v673_v53  ;;  %758 = vmatpush.bf16.msrb.mxu0 %v664_v54  ;;  %v920_v19 = vpop.permute.xlu1 %919  ;;  %v926_v24 = vpop.permute.xlu0 %925 }
 0x11c   : > { %1597 = vrot.lane.b32.xlu0 %v4064_v42, %s3780_s25  ;;  %v949_v22 = vsel %vm943_vm3, %v920_v19, %v922_v5  ;;  %v948_v27 = vsel %vm943_vm3, %v918_v61, %v920_v19  ;;  %v951_v32 = vsel %vm943_vm3, %v924_v16, %v926_v24  ;;  %v952_v49 = vsel %vm943_vm3, %v926_v24, %v928_v40 }
 0x11d   : > { %1591 = vrot.lane.b32.xlu1 %v4062_v41, %s3780_s25  ;;  %1897 = vrot.lane.b32.xlu2 %v3997_v7, %s3781_s6  ;;  %v979_v25 = vsel %vm391_vm1, %v949_v22, 0  ;;  %v976_v33 = vsel %vm391_vm1, %v948_v27, 0  ;;  %v985_v39 = vsel %vm391_vm1, %v951_v32, 0 }
 0x121   : > { %3388 = vmatmul.msk.bf16.vlgmr.msra.gmra.mxu1 %vm387_vm2, %v4245_v55 }
 0x122   : > { %823 = vmatpush.bf16.msra.mxu1 %v679_v52  ;;  %v942_v52 = vpop.permute.xlu2 %941 }
 0x123   : > { %v932_v34 = vpop.permute.xlu0 %931  ;;  %v934_v47 = vpop.permute.xlu1 %933 }
 0x124   : > { %1899 = vrot.lane.b32.xlu0 %v4008_v13, %s3781_s6  ;;  %v954_v50 = vsel %vm943_vm3, %v930_v26, %v932_v34  ;;  %v955_v51 = vsel %vm943_vm3, %v932_v34, %v934_v47 }
 0x125   : > { %1901 = vrot.lane.b32.xlu1 %v3995_v6, %s3781_s6  ;;  %1893 = vrot.lane.b32.xlu2 %v4010_v14, %s3781_s6  ;;  %v691_v14 = vsel %vm391_vm1, %v4062_v41, 0 }
 0x129   : > { %3387 = vmatmul.msk.bf16.vlgmr.msra.gmra.mxu0 %vm387_vm2, %v4245_v55  ;;  %3389 = vmatmul.msk.bf16.vlgmr.msra.gmra.mxu2 %vm387_vm2, %v4245_v55 }
 0x12a   : > { %3390 = vmatmul.msk.bf16.vlgmr.msra.gmra.mxu3 %vm387_vm2, %v4245_v55  ;;  %836 = vmatpush.bf16.msra.mxu2 %v682_v56  ;;  %v994_v56 = vsel %vm391_vm1, %v954_v50, 0  ;;  %v1244_v1 = vpop.permute.xlu2 %1243 }
 0x12b   : > { %849 = vmatpush.bf16.msra.mxu3 %v685_v57  ;;  %810 = vmatpush.bf16.msra.mxu0 %v676_v58  ;;  %v938_v48 = vpop.permute.xlu0 %937  ;;  %v997_v57 = vsel %vm391_vm1, %v955_v51, 0  ;;  %v940_v58 = vpop.permute.xlu1 %939 }
 0x12c   : > { %1895 = vrot.lane.b32.xlu0 %v3999_v8, %s3781_s6  ;;  %v958_v9 = vsel %vm943_vm3, %v938_v48, %v940_v58  ;;  %v959_v10 = vsel %vm943_vm3, %v940_v58, %v942_v52 }
 0x12d   : > { %1905 = vrot.lane.b32.xlu1 %v4012_v15, %s3781_s6  ;;  %1907 = vrot.lane.b32.xlu2 %v4021_v20, %s3781_s6  ;;  %v1009_v19 = vsel %vm391_vm1, %v959_v10, 0 }
 0x131   : > { %3392 = vmatmul.msk.bf16.vlgmr.msrb.gmra.mxu1 %vm387_vm2, %v4245_v55 }
 0x132   : > { %875 = vmatpush.bf16.msrb.mxu1 %v691_v14  ;;  %v1240_v22 = vpop.permute.xlu2 %1239 }
 0x133   : > { %v936_v14 = vpop.permute.xlu0 %935  ;;  %v1242_v2 = vpop.permute.xlu1 %1241 }
 0x134   : > { %1909 = vrot.lane.b32.xlu0 %v4023_v21, %s3781_s6  ;;  %v957_v60 = vsel %vm943_vm3, %v936_v14, %v938_v48 }
 0x135   : > { %1903 = vrot.lane.b32.xlu1 %v4026_v23, %s3781_s6  ;;  %1913 = vrot.lane.b32.xlu2 %v4035_v28, %s3781_s6 }
 0x139   : > { %3391 = vmatmul.msk.bf16.vlgmr.msrb.gmra.mxu0 %vm387_vm2, %v4245_v55  ;;  %3393 = vmatmul.msk.bf16.vlgmr.msrb.gmra.mxu2 %vm387_vm2, %v4245_v55 }
 0x13a   : > { %3394 = vmatmul.msk.bf16.vlgmr.msrb.gmra.mxu3 %vm387_vm2, %v4245_v55  ;;  %888 = vmatpush.bf16.msrb.mxu2 %v694_v62  ;;  %v1254_v58 = vpop.permute.xlu2 %1253 }
 0x13b   : > { %901 = vmatpush.bf16.msrb.mxu3 %v697_v63  ;;  %862 = vmatpush.bf16.msrb.mxu0 %v688_v0  ;;  %v1003_v0 = vsel %vm391_vm1, %v957_v60, 0  ;;  %v1238_v27 = vpop.permute.xlu1 %1237 }
 0x13c   : > { %1915 = vrot.lane.b32.xlu0 %v4037_v29, %s3781_s6 }
 0x13d   : > { %1917 = vrot.lane.b32.xlu1 %v4040_v31, %s3781_s6  ;;  %1911 = vrot.lane.b32.xlu2 %v4048_v35, %s3781_s6 }
 0x141   : > { %3396 = vmatmul.msk.bf16.vlgmr.msra.gmra.mxu1 %vm387_vm2, %v4245_v55 }
 0x142   : > { %1031 = vmatpush.bf16.msra.mxu1 %v967_v4  ;;  %v956_v4 = vsel %vm943_vm3, %v934_v47, %v936_v14 }
 0x143   : > { %v1000_v16 = vsel %vm391_vm1, %v956_v4, 0  ;;  %v1252_v50 = vpop.permute.xlu1 %1251 }
 0x144   : > { %1921 = vrot.lane.b32.xlu0 %v4050_v36, %s3781_s6 }
 0x145   : > { %1923 = vrot.lane.b32.xlu1 %v4054_v38, %s3781_s6  ;;  %1925 = vrot.lane.b32.xlu2 %v4064_v42, %s3781_s6 }
 0x149   : > { %3395 = vmatmul.msk.bf16.vlgmr.msra.gmra.mxu0 %vm387_vm2, %v4245_v55  ;;  %3397 = vmatmul.msk.bf16.vlgmr.msra.gmra.mxu2 %vm387_vm2, %v4245_v55 }
 0x14a   : > { %3398 = vmatmul.msk.bf16.vlgmr.msra.gmra.mxu3 %vm387_vm2, %v4245_v55  ;;  %1044 = vmatpush.bf16.msra.mxu2 %v970_v12 }
 0x14b   : > { %1057 = vmatpush.bf16.msra.mxu3 %v973_v17  ;;  %1018 = vmatpush.bf16.msra.mxu0 %v964_v18  ;;  %v1246_v17 = vpop.permute.xlu0 %1245  ;;  %v1006_v18 = vsel %vm391_vm1, %v958_v9, 0 }
 0x14c   : > { %1919 = vrot.lane.b32.xlu0 %v4062_v41, %s3781_s6  ;;  %v1275_v43 = vsel %vm1271_vm4, %v1244_v1, %v1246_v17 }
 0x14d   : > { %2225 = vrot.lane.b32.xlu1 %v4008_v13, %s3782_s15  ;;  %2227 = vrot.lane.b32.xlu2 %v3995_v6, %s3782_s15  ;;  %v1301_v51 = vsel %vm391_vm1, %v1275_v43, 0 }
 0x151   : > { %3400 = vmatmul.msk.bf16.vlgmr.msrb.gmra.mxu1 %vm387_vm2, %v4245_v55 }
 0x152   : > { %1083 = vmatpush.bf16.msrb.mxu1 %v979_v25  ;;  %v1273_v25 = vsel %vm1271_vm4, %v1240_v22, %v1242_v2 }
 0x153   : > { %v1250_v34 = vpop.permute.xlu0 %1249 }
 0x154   : > { %2229 = vrot.lane.b32.xlu0 %v4026_v23, %s3782_s15  ;;  %v1278_v4 = vsel %vm1271_vm4, %v1250_v34, %v1252_v50 }
 0x155   : > { %2221 = vrot.lane.b32.xlu1 %v3999_v8, %s3782_s15  ;;  %2223 = vrot.lane.b32.xlu2 %v3997_v7, %s3782_s15 }
 0x159   : > { %3399 = vmatmul.msk.bf16.vlgmr.msrb.gmra.mxu0 %vm387_vm2, %v4245_v55  ;;  %3401 = vmatmul.msk.bf16.vlgmr.msrb.gmra.mxu2 %vm387_vm2, %v4245_v55 }
 0x15a   : > { %3402 = vmatmul.msk.bf16.vlgmr.msrb.gmra.mxu3 %vm387_vm2, %v4245_v55  ;;  %1070 = vmatpush.bf16.msrb.mxu0 %v976_v33  ;;  %v988_v55 = vsel %vm391_vm1, %v952_v49, 0  ;;  %v1295_v33 = vsel %vm391_vm1, %v1273_v25, 0 }
 0x15b   : > { %1096 = vmatpush.bf16.msrb.mxu2 %v982_v37  ;;  %1109 = vmatpush.bf16.msrb.mxu3 %v985_v39  ;;  %v1274_v39 = vsel %vm1271_vm4, %v1242_v2, %v1244_v1 }
 0x15c   : > { %2233 = vrot.lane.b32.xlu0 %v4021_v20, %s3782_s15  ;;  %v1298_v49 = vsel %vm391_vm1, %v1274_v39, 0 }
 0x15d   : > { %2235 = vrot.lane.b32.xlu1 %v4023_v21, %s3782_s15  ;;  %2237 = vrot.lane.b32.xlu2 %v4048_v35, %s3782_s15 }
 0x15e   : > { %v4350_v44 = vpop.f32.mrf.mxu1 }
 0x161   : > { %3405 = vmatmul.msk.bf16.vlgmr.msra.gmra.mxu1 %vm387_vm2, %v4355_v45 }
 0x162   : > { %1135 = vmatpush.bf16.msra.mxu1 %v991_v46  ;;  %v1272_v46 = vsel %vm1271_vm4, %v1238_v27, %v1240_v22 }
 0x164   : > { %2231 = vrot.lane.b32.xlu0 %v4012_v15, %s3782_s15 }
 0x165   : > { %2241 = vrot.lane.b32.xlu1 %v4037_v29, %s3782_s15  ;;  %2243 = vrot.lane.b32.xlu2 %v4040_v31, %s3782_s15 }
 0x166   : > { %v4369_v53 = vpop.f32.mrf.mxu0  ;;  %v464_v54 = vpop.f32.mrf.mxu1 }
 0x167   : > { %v1292_v54 = vsel %vm391_vm1, %v1272_v46, 0 }
 0x169   : > { %3404 = vmatmul.msk.bf16.vlgmr.msra.gmra.mxu0 %vm387_vm2, %v4355_v45  ;;  %3406 = vmatmul.msk.bf16.vlgmr.msra.gmra.mxu2 %vm387_vm2, %v4355_v45 }
 0x16a   : > { %3407 = vmatmul.msk.bf16.vlgmr.msra.gmra.mxu3 %vm387_vm2, %v4355_v45  ;;  %1122 = vmatpush.bf16.msra.mxu0 %v988_v55  ;;  %v1248_v55 = vpop.permute.xlu0 %1247 }
 0x16b   : > { %1148 = vmatpush.bf16.msra.mxu2 %v994_v56  ;;  %1161 = vmatpush.bf16.msra.mxu3 %v997_v57  ;;  %v1277_v56 = vsel %vm1271_vm4, %v1248_v55, %v1250_v34  ;;  %v1276_v2 = vsel %vm1271_vm4, %v1246_v17, %v1248_v55  ;;  %v4484_v34 = vld [vmem:[%s5360_s2 + $0xc] sm:$0xf] }
 0x16c   : > { %v4384_v59 = vpop.f32.mrf.mxu2  ;;  %2245 = vrot.lane.b32.xlu0 %v4062_v41, %s3782_s15 }
 0x16d   : > { %v4389_v61 = vpop.f32.mrf.mxu3  ;;  %2239 = vrot.lane.b32.xlu1 %v4035_v28, %s3782_s15  ;;  %2249 = vrot.lane.b32.xlu2 %v4054_v38, %s3782_s15 }
 0x16e   : > { %v451_v62 = vpop.f32.mrf.mxu0  ;;  %v4391_v63 = vpop.f32.mrf.mxu1 }
 0x16f   : > { %v1307_v62 = vsel %vm391_vm1, %v1277_v56, 0 }
 0x171   : > { %3409 = vmatmul.msk.bf16.vlgmr.msrb.gmra.mxu1 %vm387_vm2, %v4355_v45 }
 0x172   : > { %1187 = vmatpush.bf16.msrb.mxu1 %v1003_v0  ;;  %v1258_v0 = vpop.permute.xlu1 %1257  ;;  %v1262_v39 = vpop.permute.xlu0 %1261 }
 0x174   : > { %v477_v3 = vpop.f32.mrf.mxu2  ;;  %2251 = vrot.lane.b32.xlu0 %v4064_v42, %s3782_s15 }
 0x175   : > { %v490_v5 = vpop.f32.mrf.mxu3  ;;  %2247 = vrot.lane.b32.xlu2 %v4050_v36, %s3782_s15 }
 0x176   : > { %v4405_v11 = vpop.f32.mrf.mxu0  ;;  %v516_v12 = vpop.f32.mrf.mxu1  ;;  %v1279_v5 = vsel %vm1271_vm4, %v1252_v50, %v1254_v58 }
 0x177   : > { %v1304_v12 = vsel %vm391_vm1, %v1276_v2, 0 }
 0x179   : > { %3408 = vmatmul.msk.bf16.vlgmr.msrb.gmra.mxu0 %vm387_vm2, %v4355_v45  ;;  %3410 = vmatmul.msk.bf16.vlgmr.msrb.gmra.mxu2 %vm387_vm2, %v4355_v45 }
 0x17a   : > { %3411 = vmatmul.msk.bf16.vlgmr.msrb.gmra.mxu3 %vm387_vm2, %v4355_v45  ;;  %1174 = vmatpush.bf16.msrb.mxu0 %v1000_v16  ;;  %v1260_v16 = vpop.permute.xlu2 %1259  ;;  %v1256_v17 = vpop.permute.xlu1 %1255 }
 0x17b   : > { %1200 = vmatpush.bf16.msrb.mxu2 %v1006_v18  ;;  %1213 = vmatpush.bf16.msrb.mxu3 %v1009_v19  ;;  %v1310_v18 = vsel %vm391_vm1, %v1278_v4, 0  ;;  %v1313_v19 = vsel %vm391_vm1, %v1279_v5, 0  ;;  %v1281_v25 = vsel %vm1271_vm4, %v1256_v17, %v1258_v0  ;;  %v1280_v46 = vsel %vm1271_vm4, %v1254_v58, %v1256_v17 }
 0x17c   : > { %v4420_v24 = vpop.f32.mrf.mxu2  ;;  %2553 = vrot.lane.b32.xlu0 %v4008_v13, %s3783_s26  ;;  %v1316_v55 = vsel %vm391_vm1, %v1280_v46, 0 }
 0x17d   : > { %v4425_v26 = vpop.f32.mrf.mxu3  ;;  %2557 = vrot.lane.b32.xlu2 %v4026_v23, %s3783_s26 }
 0x17e   : > { %v503_v30 = vpop.f32.mrf.mxu0  ;;  %v4427_v32 = vpop.f32.mrf.mxu1 }
 0x181   : > { %3413 = vmatmul.msk.bf16.vlgmr.msra.gmra.mxu1 %vm387_vm2, %v4355_v45 }
 0x182   : > { %1359 = vmatpush.bf16.msra.mxu1 %v1295_v33  ;;  %v1270_v58 = vpop.permute.xlu1 %1269 }
 0x184   : > { %v529_v37 = vpop.f32.mrf.mxu2  ;;  %2549 = vrot.lane.b32.xlu0 %v3999_v8, %s3783_s26 }
 0x185   : > { %v542_v40 = vpop.f32.mrf.mxu3  ;;  %2561 = vrot.lane.b32.xlu2 %v4021_v20, %s3783_s26 }
 0x186   : > { %v4437_v47 = vpop.f32.mrf.mxu0  ;;  %v568_v48 = vpop.f32.mrf.mxu1 }
 0x187   : > { %v1266_v40 = vpop.permute.xlu2 %1265 }
 0x189   : > { %3412 = vmatmul.msk.bf16.vlgmr.msra.gmra.mxu0 %vm387_vm2, %v4355_v45  ;;  %3414 = vmatmul.msk.bf16.vlgmr.msra.gmra.mxu2 %vm387_vm2, %v4355_v45 }
 0x18a   : > { %3415 = vmatmul.msk.bf16.vlgmr.msra.gmra.mxu3 %vm387_vm2, %v4355_v45  ;;  %1372 = vmatpush.bf16.msra.mxu2 %v1298_v49  ;;  %v1283_v49 = vsel %vm1271_vm4, %v1260_v16, %v1262_v39 }
 0x18b   : > { %1385 = vmatpush.bf16.msra.mxu3 %v1301_v51  ;;  %1346 = vmatpush.bf16.msra.mxu0 %v1292_v54 }
 0x18c   : > { %v4448_v52 = vpop.f32.mrf.mxu2  ;;  %2563 = vrot.lane.b32.xlu0 %v4023_v21, %s3783_s26 }
 0x18d   : > { %v4451_v57 = vpop.f32.mrf.mxu3  ;;  %2559 = vrot.lane.b32.xlu2 %v4012_v15, %s3783_s26 }
 0x18e   : > { %v555_v14 = vpop.f32.mrf.mxu0  ;;  %v4453_v60 = vpop.f32.mrf.mxu1 }
 0x18f   : > { %v1325_v14 = vsel %vm391_vm1, %v1283_v49, 0 }
 0x191   : > { %3417 = vmatmul.msk.bf16.vlgmr.msrb.gmra.mxu1 %vm387_vm2, %v4355_v45 }
 0x192   : > { %1411 = vmatpush.bf16.msrb.mxu1 %v1307_v62  ;;  %v1264_v62 = vpop.permute.xlu2 %1263 }
 0x194   : > { %v581_v1 = vpop.f32.mrf.mxu2  ;;  %2569 = vrot.lane.b32.xlu0 %v4037_v29, %s3783_s26 }
 0x195   : > { %v594_v3 = vpop.f32.mrf.mxu3  ;;  %v1285_v1 = vsel %vm1271_vm4, %v1264_v62, %v1266_v40  ;;  %2573 = vrot.lane.b32.xlu2 %v4062_v41, %s3783_s26 }
 0x196   : > { %v4461_v9 = vpop.f32.mrf.mxu0  ;;  %v620_v10 = vpop.f32.mrf.mxu1 }
 0x199   : > { %3416 = vmatmul.msk.bf16.vlgmr.msrb.gmra.mxu0 %vm387_vm2, %v4355_v45  ;;  %3418 = vmatmul.msk.bf16.vlgmr.msrb.gmra.mxu2 %vm387_vm2, %v4355_v45 }
 0x19a   : > { %3419 = vmatmul.msk.bf16.vlgmr.msrb.gmra.mxu3 %vm387_vm2, %v4355_v45  ;;  %1398 = vmatpush.bf16.msrb.mxu0 %v1304_v12  ;;  %v1319_v45 = vsel %vm391_vm1, %v1281_v25, 0  ;;  %v1574_v46 = vpop.permute.xlu2 %1573 }
 0x19b   : > { %1424 = vmatpush.bf16.msrb.mxu2 %v1310_v18  ;;  %1437 = vmatpush.bf16.msrb.mxu3 %v1313_v19  ;;  %v1284_v19 = vsel %vm1271_vm4, %v1262_v39, %v1264_v62 }
 0x19c   : > { %v4476_v22 = vpop.f32.mrf.mxu2  ;;  %2567 = vrot.lane.b32.xlu0 %v4035_v28, %s3783_s26 }
 0x19d   : > { %v4479_v27 = vpop.f32.mrf.mxu3  ;;  %2579 = vrot.lane.b32.xlu2 %v4064_v42, %s3783_s26 }
 0x19e   : > { %v607_v30 = vpop.f32.mrf.mxu0  ;;  %v721_v33 = vpop.f32.mrf.mxu1 }
 0x19f   : > { %v4487_v37 = vadd.f32 %v721_v33, %v4350_v44  ;;  %v1282_v44 = vsel %vm1271_vm4, %v1258_v0, %v1260_v16  ;;  %v1331_v16 = vsel %vm391_vm1, %v1285_v1, 0 }
 0x1a0   : > { %v1322_v56 = vsel %vm391_vm1, %v1282_v44, 0 }
 0x1a1   : > { %3422 = vmatmul.msk.bf16.vlgmr.msra.gmra.mxu1 %vm387_vm2, %v4484_v34 }
 0x1a2   : > { %1463 = vmatpush.bf16.msra.mxu1 %v1319_v45  ;;  %v1578_v62 = vpop.permute.xlu2 %1577 }
 0x1a4   : > { %v633_v43 = vpop.f32.mrf.mxu2 }
 0x1a5   : > { %v646_v48 = vpop.f32.mrf.mxu3  ;;  %v1328_v43 = vsel %vm391_vm1, %v1284_v19, 0  ;;  %2881 = vrot.lane.b32.xlu2 %v4008_v13, %s3784_s9 }
 0x1a6   : > { %v708_v50 = vpop.f32.mrf.mxu0  ;;  %v723_v51 = vpop.f32.mrf.mxu1 }
 0x1a7   : > { %v4500_v54 = vadd.f32 %v708_v50, %v4369_v53  ;;  %v1268_v53 = vpop.permute.xlu0 %1267 }
 0x1a8   : > { %v1287_v25 = vsel %vm1271_vm4, %v1268_v53, %v1270_v58 }
 0x1a9   : > { %3421 = vmatmul.msk.bf16.vlgmr.msra.gmra.mxu0 %vm387_vm2, %v4484_v34  ;;  %3423 = vmatmul.msk.bf16.vlgmr.msra.gmra.mxu2 %vm387_vm2, %v4484_v34  ;;  %v1337_v44 = vsel %vm391_vm1, %v1287_v25, 0 }
 0x1aa   : > { %3424 = vmatmul.msk.bf16.vlgmr.msra.gmra.mxu3 %vm387_vm2, %v4484_v34  ;;  %1450 = vmatpush.bf16.msra.mxu0 %v1316_v55 }
 0x1ab   : > { %1476 = vmatpush.bf16.msra.mxu2 %v1322_v56  ;;  %1489 = vmatpush.bf16.msra.mxu3 %v1325_v14 }
 0x1ac   : > { %v734_v0 = vpop.f32.mrf.mxu2 }
 0x1ad   : > { %v4517_v2 = vadd.f32 %v734_v0, %v4384_v59  ;;  %v747_v3 = vpop.f32.mrf.mxu3  ;;  %v1572_v59 = vpop.permute.xlu1 %1571  ;;  %2877 = vrot.lane.b32.xlu2 %v3999_v8, %s3784_s9 }
 0x1ae   : > { %v4520_v4 = vadd.f32 %v747_v3, %v4389_v61  ;;  %v710_v5 = vpop.f32.mrf.mxu0  ;;  %v773_v10 = vpop.f32.mrf.mxu1  ;;  %v1603_v3 = vsel %vm1599_vm5, %v1572_v59, %v1574_v46 }
 0x1af   : > { %v4523_v12 = vadd.f32 %v773_v10, %v4391_v63  ;;  %v1570_v61 = vpop.permute.xlu0 %1569  ;;  %v1286_v63 = vsel %vm1271_vm4, %v1266_v40, %v1268_v53  ;;  %v1629_v19 = vsel %vm391_vm1, %v1603_v3, 0 }
 0x1b0   : > { %v1334_v48 = vsel %vm391_vm1, %v1286_v63, 0 }
 0x1b1   : > { %3426 = vmatmul.msk.bf16.vlgmr.msrb.gmra.mxu1 %vm387_vm2, %v4484_v34 }
 0x1b2   : > { %1515 = vmatpush.bf16.msrb.mxu1 %v1331_v16 }
 0x1b4   : > { %v736_v18 = vpop.f32.mrf.mxu2 }
 0x1b5   : > { %v749_v17 = vpop.f32.mrf.mxu3  ;;  %2891 = vrot.lane.b32.xlu2 %v4023_v21, %s3784_s9 }
 0x1b6   : > { %v760_v30 = vpop.f32.mrf.mxu0  ;;  %v775_v33 = vpop.f32.mrf.mxu1 }
 0x1b7   : > { %v4536_v45 = vadd.f32 %v760_v30, %v4405_v11  ;;  %v1568_v11 = vpop.permute.xlu1 %1567  ;;  %v1566_v51 = vpop.permute.xlu0 %1565 }
 0x1b8   : > { %v1601_v40 = vsel %vm1599_vm5, %v1568_v11, %v1570_v61 }
 0x1b9   : > { %3425 = vmatmul.msk.bf16.vlgmr.msrb.gmra.mxu0 %vm387_vm2, %v4484_v34  ;;  %3427 = vmatmul.msk.bf16.vlgmr.msrb.gmra.mxu2 %vm387_vm2, %v4484_v34  ;;  %v1623_v58 = vsel %vm391_vm1, %v1601_v40, 0 }
 0x1ba   : > { %3428 = vmatmul.msk.bf16.vlgmr.msrb.gmra.mxu3 %vm387_vm2, %v4484_v34  ;;  %1502 = vmatpush.bf16.msrb.mxu0 %v1328_v43 }
 0x1bb   : > { %1528 = vmatpush.bf16.msrb.mxu2 %v1334_v48  ;;  %1541 = vmatpush.bf16.msrb.mxu3 %v1337_v44 }
 0x1bc   : > { %v786_v39 = vpop.f32.mrf.mxu2 }
 0x1bd   : > { %v4553_v49 = vadd.f32 %v786_v39, %v4420_v24  ;;  %v799_v50 = vpop.f32.mrf.mxu3  ;;  %v1602_v24 = vsel %vm1599_vm5, %v1570_v61, %v1572_v59  ;;  %v1576_v59 = vpop.permute.xlu2 %1575  ;;  %2897 = vrot.lane.b32.xlu2 %v4037_v29, %s3784_s9 }
 0x1be   : > { %v4556_v55 = vadd.f32 %v799_v50, %v4425_v26  ;;  %v762_v56 = vpop.f32.mrf.mxu0  ;;  %v825_v14 = vpop.f32.mrf.mxu1  ;;  %v1600_v26 = vsel %vm1599_vm5, %v1566_v51, %v1568_v11  ;;  %v1626_v16 = vsel %vm391_vm1, %v1602_v24, 0  ;;  %v1605_v61 = vsel %vm1599_vm5, %v1576_v59, %v1578_v62 }
 0x1bf   : > { %v4559_v53 = vadd.f32 %v825_v14, %v4427_v32  ;;  %v1580_v18 = vpop.permute.xlu0 %1579  ;;  %v1620_v17 = vsel %vm391_vm1, %v1600_v26, 0  ;;  %v1582_v30 = vpop.permute.xlu1 %1581  ;;  %v1635_v11 = vsel %vm391_vm1, %v1605_v61, 0 }
 0x1c0   : > { %v1606_v51 = vsel %vm1599_vm5, %v1578_v62, %v1580_v18 }
 0x1c1   : > { %3430 = vmatmul.msk.bf16.vlgmr.msra.gmra.mxu1 %vm387_vm2, %v4484_v34  ;;  %v1638_v24 = vsel %vm391_vm1, %v1606_v51, 0 }
 0x1c2   : > { %1687 = vmatpush.bf16.msra.mxu1 %v1623_v58 }
 0x1c4   : > { %v788_v0 = vpop.f32.mrf.mxu2 }
 0x1c5   : > { %v801_v1 = vpop.f32.mrf.mxu3  ;;  %2895 = vrot.lane.b32.xlu2 %v4035_v28, %s3784_s9 }
 0x1c6   : > { %v812_v5 = vpop.f32.mrf.mxu0  ;;  %v827_v10 = vpop.f32.mrf.mxu1 }
 0x1c7   : > { %v4568_v32 = vadd.f32 %v812_v5, %v4437_v47  ;;  %v1586_v39 = vpop.permute.xlu0 %1585  ;;  %v1588_v0 = vpop.permute.xlu1 %1587 }
 0x1c9   : > { %3431 = vmatmul.msk.bf16.vlgmr.msra.gmra.mxu2 %vm387_vm2, %v4484_v34  ;;  %3429 = vmatmul.msk.bf16.vlgmr.msra.gmra.mxu0 %vm387_vm2, %v4484_v34 }
 0x1ca   : > { %3432 = vmatmul.msk.bf16.vlgmr.msra.gmra.mxu3 %vm387_vm2, %v4484_v34  ;;  %1700 = vmatpush.bf16.msra.mxu2 %v1626_v16 }
 0x1cb   : > { %1713 = vmatpush.bf16.msra.mxu3 %v1629_v19  ;;  %1674 = vmatpush.bf16.msra.mxu0 %v1620_v17  ;;  %v1590_v19 = vpop.permute.xlu2 %1589 }
 0x1cc   : > { %v838_v47 = vpop.f32.mrf.mxu2 }
 0x1cd   : > { %v4581_v63 = vadd.f32 %v838_v47, %v4448_v52  ;;  %v851_v25 = vpop.f32.mrf.mxu3  ;;  %v1604_v52 = vsel %vm1599_vm5, %v1574_v46, %v1576_v59  ;;  %v1610_v47 = vsel %vm1599_vm5, %v1586_v39, %v1588_v0 }
 0x1ce   : > { %v4584_v33 = vadd.f32 %v851_v25, %v4451_v57  ;;  %v814_v43 = vpop.f32.mrf.mxu0  ;;  %v877_v48 = vpop.f32.mrf.mxu1  ;;  %v1607_v57 = vsel %vm1599_vm5, %v1580_v18, %v1582_v30  ;;  %v1632_v58 = vsel %vm391_vm1, %v1604_v52, 0 }
 0x1cf   : > { %v4587_v44 = vadd.f32 %v877_v48, %v4453_v60  ;;  %v1641_v1 = vsel %vm391_vm1, %v1607_v57, 0 }
 0x1d1   : > { %3434 = vmatmul.msk.bf16.vlgmr.msrb.gmra.mxu1 %vm387_vm2, %v4484_v34 }
 0x1d2   : > { %1739 = vmatpush.bf16.msrb.mxu1 %v1635_v11  ;;  %v1650_v11 = vsel %vm391_vm1, %v1610_v47, 0 }
 0x1d4   : > { %v840_v40 = vpop.f32.mrf.mxu2 }
 0x1d5   : > { %v853_v50 = vpop.f32.mrf.mxu3 }
 0x1d6   : > { %v864_v56 = vpop.f32.mrf.mxu0  ;;  %v879_v14 = vpop.f32.mrf.mxu1 }
 0x1d7   : > { %v4596_v60 = vadd.f32 %v864_v56, %v4461_v9  ;;  %v1584_v9 = vpop.permute.xlu0 %1583 }
 0x1d8   : > { %v1609_v62 = vsel %vm1599_vm5, %v1584_v9, %v1586_v39  ;;  %v1608_v17 = vsel %vm1599_vm5, %v1582_v30, %v1584_v9  ;;  %v1596_v30 = vpop.permute.xlu2 %1595 }
 0x1d9   : > { %3435 = vmatmul.msk.bf16.vlgmr.msrb.gmra.mxu2 %vm387_vm2, %v4484_v34  ;;  %3433 = vmatmul.msk.bf16.vlgmr.msrb.gmra.mxu0 %vm387_vm2, %v4484_v34  ;;  %v1647_v18 = vsel %vm391_vm1, %v1609_v62, 0  ;;  %v1644_v8 = vsel %vm391_vm1, %v1608_v17, 0 }
 0x1da   : > { %3436 = vmatmul.msk.bf16.vlgmr.msrb.gmra.mxu3 %vm387_vm2, %v4484_v34  ;;  %1726 = vmatpush.bf16.msrb.mxu0 %v1632_v58  ;;  %v4619_v34 = vld [vmem:[%s5360_s2 + $0x10] sm:$0xf] }
 0x1db   : > { %1752 = vmatpush.bf16.msrb.mxu2 %v1638_v24  ;;  %1765 = vmatpush.bf16.msrb.mxu3 %v1641_v1 }
 0x1dc   : > { %v890_v46 = vpop.f32.mrf.mxu2 }
 0x1dd   : > { %v4611_v3 = vadd.f32 %v890_v46, %v4476_v22  ;;  %v903_v13 = vpop.f32.mrf.mxu3  ;;  %v1594_v22 = vpop.permute.xlu1 %1593 }
 0x1de   : > { %v4614_v26 = vadd.f32 %v903_v13, %v4479_v27  ;;  %v866_v5 = vpop.f32.mrf.mxu0  ;;  %v1033_v10 = vpop.f32.mrf.mxu1  ;;  %v1614_v9 = vsel %vm1599_vm5, %v1594_v22, %v1596_v30  ;;  %v3612_v13 = vld [vmem:[%s238_s8] sm:$0xff] }
 0x1df   : > { %v4622_v16 = vadd.f32 %v1033_v10, %v4487_v37  ;;  %v1611_v37 = vsel %vm1599_vm5, %v1588_v0, %v1590_v19  ;;  %v1598_v48 = vpop.permute.xlu0 %1597  ;;  %v330_v5 = vunpack.c.h.b16 %v3612_v13 }
 0x1e0   : > { %v1653_v40 = vsel %vm391_vm1, %v1611_v37, 0 }
 0x1e1   : > { %3439 = vmatmul.msk.bf16.vlgmr.msra.gmra.mxu1 %vm387_vm2, %v4619_v34  ;;  %v332_v17 = vpack.c.b16 %v330_v5, %v330_v5 }
 0x1e2   : > { %1791 = vmatpush.bf16.msra.mxu1 %v1647_v18 }
 0x1e3   : > { %2253 = vrot.lane.b32.xlu1 %v332_v17, %s3782_s15  ;;  %2581 = vrot.lane.b32.xlu0 %v332_v17, %s3783_s26  ;;  %s3369_s15 = sshll.u32 %s3974_s13, 7 }
 0x1e4   : > { %v892_v27 = vpop.f32.mrf.mxu2  ;;  %2909 = vrot.lane.b32.xlu2 %v332_v17, %s3784_s9  ;;  %s5261_s24 = scalar_lea.vmem [#allocation7], %s3369_s15 }
 0x1e5   : > { %v905_v59 = vpop.f32.mrf.mxu3  ;;  %v1662_v27 = vsel %vm391_vm1, %v1614_v9, 0  ;;  %s3255_s22 = sshll.u32 %s5261_s24, 4  ;;  %s3256_s22 = int_to_ptr.vmem [resolvable:$true] %s3255_s22 }
 0x1e6   : > { %v1020_v61 = vpop.f32.mrf.mxu0  ;;  %v1035_v25 = vpop.f32.mrf.mxu1 }
 0x1e7   : > { %v4633_v43 = vadd.f32 %v1020_v61, %v4500_v54  ;;  %v1592_v54 = vpop.permute.xlu1 %1591  ;;  %v1900_v0 = vpop.permute.xlu0 %1899 }
 0x1e8   : > { %v1613_v52 = vsel %vm1599_vm5, %v1592_v54, %v1594_v22 }
 0x1e9   : > { %3438 = vmatmul.msk.bf16.vlgmr.msra.gmra.mxu0 %vm387_vm2, %v4619_v34  ;;  %3440 = vmatmul.msk.bf16.vlgmr.msra.gmra.mxu2 %vm387_vm2, %v4619_v34  ;;  %v1659_v58 = vsel %vm391_vm1, %v1613_v52, 0 }
 0x1ea   : > { %3441 = vmatmul.msk.bf16.vlgmr.msra.gmra.mxu3 %vm387_vm2, %v4619_v34  ;;  %1778 = vmatpush.bf16.msra.mxu0 %v1644_v8 }
 0x1eb   : > { %1804 = vmatpush.bf16.msra.mxu2 %v1650_v11  ;;  %1817 = vmatpush.bf16.msra.mxu3 %v1653_v40 }
 0x1ec   : > { %v1046_v39 = vpop.f32.mrf.mxu2  ;;  %2555 = vrot.lane.b32.xlu1 %v3995_v6, %s3783_s26  ;;  %2883 = vrot.lane.b32.xlu0 %v3995_v6, %s3784_s9 }
 0x1ed   : > { %v4648_v50 = vadd.f32 %v1046_v39, %v4517_v2  ;;  %v1059_v21 = vpop.f32.mrf.mxu3  ;;  %v1898_v2 = vpop.permute.xlu2 %1897 }
 0x1ee   : > { %v4651_v51 = vadd.f32 %v1059_v21, %v4520_v4  ;;  %v1022_v57 = vpop.f32.mrf.mxu0  ;;  %v1085_v56 = vpop.f32.mrf.mxu1  ;;  %v1612_v4 = vsel %vm1599_vm5, %v1590_v19, %v1592_v54 }
 0x1ef   : > { %v4654_v14 = vadd.f32 %v1085_v56, %v4523_v12  ;;  %v1615_v12 = vsel %vm1599_vm5, %v1596_v30, %v1598_v48  ;;  %v1656_v10 = vsel %vm391_vm1, %v1612_v4, 0  ;;  %v4670_v18 = vpop.permute.xlu1 %1901  ;;  %v1930_v30 = vsel %vm1927_vm6, %v1898_v2, %v1900_v0 }
 0x1f0   : > { %v1665_v19 = vsel %vm391_vm1, %v1615_v12, 0  ;;  %v1954_v57 = vsel %vm391_vm1, %v1930_v30, 0 }
 0x1f1   : > { %3443 = vmatmul.msk.bf16.vlgmr.msrb.gmra.mxu1 %vm387_vm2, %v4619_v34 }
 0x1f2   : > { %1843 = vmatpush.bf16.msrb.mxu1 %v1659_v58 }
 0x1f4   : > { %v1048_v24 = vpop.f32.mrf.mxu2  ;;  %2551 = vrot.lane.b32.xlu1 %v3997_v7, %s3783_s26  ;;  %2879 = vrot.lane.b32.xlu0 %v3997_v7, %s3784_s9 }
 0x1f5   : > { %v1061_v1 = vpop.f32.mrf.mxu3  ;;  %v1894_v37 = vpop.permute.xlu2 %1893 }
 0x1f6   : > { %v1072_v46 = vpop.f32.mrf.mxu0  ;;  %v1087_v62 = vpop.f32.mrf.mxu1 }
 0x1f7   : > { %v4667_v29 = vadd.f32 %v1072_v46, %v4536_v45  ;;  %v1896_v45 = vpop.permute.xlu0 %1895  ;;  %v1906_v40 = vpop.permute.xlu1 %1905 }
 0x1f8   : > { %v1929_v59 = vsel %vm1927_vm6, %v1896_v45, %v1898_v2  ;;  %v1928_v54 = vsel %vm1927_vm6, %v1894_v37, %v1896_v45 }
 0x1f9   : > { %3442 = vmatmul.msk.bf16.vlgmr.msrb.gmra.mxu0 %vm387_vm2, %v4619_v34  ;;  %3444 = vmatmul.msk.bf16.vlgmr.msrb.gmra.mxu2 %vm387_vm2, %v4619_v34  ;;  %v1951_v11 = vsel %vm391_vm1, %v1929_v59, 0  ;;  %v1948_v2 = vsel %vm391_vm1, %v1928_v54, 0 }
 0x1fa   : > { %3445 = vmatmul.msk.bf16.vlgmr.msrb.gmra.mxu3 %vm387_vm2, %v4619_v34  ;;  %1830 = vmatpush.bf16.msrb.mxu0 %v1656_v10 }
 0x1fb   : > { %1856 = vmatpush.bf16.msrb.mxu2 %v1662_v27  ;;  %1869 = vmatpush.bf16.msrb.mxu3 %v1665_v19 }
 0x1fc   : > { %v1098_v22 = vpop.f32.mrf.mxu2  ;;  %2565 = vrot.lane.b32.xlu1 %v4048_v35, %s3783_s26  ;;  %2893 = vrot.lane.b32.xlu0 %v4048_v35, %s3784_s9 }
 0x1fd   : > { %v4686_v28 = vadd.f32 %v1098_v22, %v4553_v49  ;;  %v1111_v47 = vpop.f32.mrf.mxu3  ;;  %v1908_v56 = vpop.permute.xlu2 %1907 }
 0x1fe   : > { %v4689_v61 = vadd.f32 %v1111_v47, %v4556_v55  ;;  %v1074_v25 = vpop.f32.mrf.mxu0  ;;  %v1137_v8 = vpop.f32.mrf.mxu1 }
 0x1ff   : > { %v4692_v48 = vadd.f32 %v1137_v8, %v4559_v53  ;;  %v1931_v53 = vsel %vm1927_vm6, %v1900_v0, %v4670_v18  ;;  %v1904_v6 = vpop.permute.xlu1 %1903  ;;  %v1910_v1 = vpop.permute.xlu0 %1909 }
 0x200   : > { %v1957_v58 = vsel %vm391_vm1, %v1931_v53, 0  ;;  %v1933_v0 = vsel %vm1927_vm6, %v1904_v6, %v1906_v40  ;;  %v1935_v10 = vsel %vm1927_vm6, %v1908_v56, %v1910_v1 }
 0x201   : > { %3447 = vmatmul.msk.bf16.vlgmr.msra.gmra.mxu1 %vm387_vm2, %v4619_v34  ;;  %v1963_v13 = vsel %vm391_vm1, %v1933_v0, 0  ;;  %v1969_v59 = vsel %vm391_vm1, %v1935_v10, 0 }
 0x202   : > { %2015 = vmatpush.bf16.msra.mxu1 %v1951_v11 }
 0x204   : > { %v1100_v49 = vpop.f32.mrf.mxu2  ;;  %2571 = vrot.lane.b32.xlu1 %v4040_v31, %s3783_s26  ;;  %2899 = vrot.lane.b32.xlu0 %v4040_v31, %s3784_s9 }
 0x205   : > { %v1113_v55 = vpop.f32.mrf.mxu3  ;;  %v1914_v5 = vpop.permute.xlu2 %1913 }
 0x206   : > { %v1124_v39 = vpop.f32.mrf.mxu0  ;;  %v1139_v52 = vpop.f32.mrf.mxu1 }
 0x207   : > { %v4707_v21 = vadd.f32 %v1124_v39, %v4568_v32  ;;  %v1916_v22 = vpop.permute.xlu0 %1915  ;;  %v1918_v31 = vpop.permute.xlu1 %1917 }
 0x208   : > { %v1939_v54 = vsel %vm1927_vm6, %v1916_v22, %v1918_v31 }
 0x209   : > { %3446 = vmatmul.msk.bf16.vlgmr.msra.gmra.mxu0 %vm387_vm2, %v4619_v34  ;;  %3448 = vmatmul.msk.bf16.vlgmr.msra.gmra.mxu2 %vm387_vm2, %v4619_v34 }
 0x20a   : > { %3449 = vmatmul.msk.bf16.vlgmr.msra.gmra.mxu3 %vm387_vm2, %v4619_v34  ;;  %2028 = vmatpush.bf16.msra.mxu2 %v1954_v57 }
 0x20b   : > { %2041 = vmatpush.bf16.msra.mxu3 %v1957_v58  ;;  %2002 = vmatpush.bf16.msra.mxu0 %v1948_v2 }
 0x20c   : > { %v1150_v32 = vpop.f32.mrf.mxu2  ;;  %2577 = vrot.lane.b32.xlu1 %v4054_v38, %s3783_s26  ;;  %2905 = vrot.lane.b32.xlu0 %v4054_v38, %s3784_s9 }
 0x20d   : > { %v4724_v24 = vadd.f32 %v1150_v32, %v4581_v63  ;;  %v1163_v4 = vpop.f32.mrf.mxu3  ;;  %v1932_v63 = vsel %vm1927_vm6, %v4670_v18, %v1904_v6  ;;  %v1912_v35 = vpop.permute.xlu2 %1911  ;;  %v1981_v6 = vsel %vm391_vm1, %v1939_v54, 0 }
 0x20e   : > { %v4727_v9 = vadd.f32 %v1163_v4, %v4584_v33  ;;  %v1126_v12 = vpop.f32.mrf.mxu0  ;;  %v1189_v46 = vpop.f32.mrf.mxu1  ;;  %v1960_v45 = vsel %vm391_vm1, %v1932_v63, 0  ;;  %v1937_v47 = vsel %vm1927_vm6, %v1912_v35, %v1914_v5  ;;  %v1936_v55 = vsel %vm1927_vm6, %v1910_v1, %v1912_v35 }
 0x20f   : > { %v4730_v62 = vadd.f32 %v1189_v46, %v4587_v44  ;;  %v1934_v44 = vsel %vm1927_vm6, %v1906_v40, %v1908_v56  ;;  %v4769_v40 = vld [vmem:[%s5360_s2 + $0x14] sm:$0xf]  ;;  %v1975_v30 = vsel %vm391_vm1, %v1937_v47, 0  ;;  %v1972_v56 = vsel %vm391_vm1, %v1936_v55, 0  ;;  %v1924_v38 = vpop.permute.xlu1 %1923 }
 0x210   : > { %v1966_v18 = vsel %vm391_vm1, %v1934_v44, 0 }
 0x211   : > { %3451 = vmatmul.msk.bf16.vlgmr.msrb.gmra.mxu1 %vm387_vm2, %v4619_v34 }
 0x212   : > { %2067 = vmatpush.bf16.msrb.mxu1 %v1963_v13 }
 0x214   : > { %v1152_v7 = vpop.f32.mrf.mxu2  ;;  %2575 = vrot.lane.b32.xlu1 %v4050_v36, %s3783_s26  ;;  %2903 = vrot.lane.b32.xlu0 %v4050_v36, %s3784_s9 }
 0x215   : > { %v1165_v33 = vpop.f32.mrf.mxu3  ;;  %v1926_v58 = vpop.permute.xlu2 %1925 }
 0x216   : > { %v1176_v27 = vpop.f32.mrf.mxu0  ;;  %v1191_v19 = vpop.f32.mrf.mxu1 }
 0x217   : > { %v4744_v17 = vadd.f32 %v1176_v27, %v4596_v60  ;;  %v2226_v36 = vpop.permute.xlu1 %2225 }
 0x219   : > { %3450 = vmatmul.msk.bf16.vlgmr.msrb.gmra.mxu0 %vm387_vm2, %v4619_v34  ;;  %3452 = vmatmul.msk.bf16.vlgmr.msrb.gmra.mxu2 %vm387_vm2, %v4619_v34 }
 0x21a   : > { %3453 = vmatmul.msk.bf16.vlgmr.msrb.gmra.mxu3 %vm387_vm2, %v4619_v34  ;;  %2054 = vmatpush.bf16.msrb.mxu0 %v1960_v45 }
 0x21b   : > { %2080 = vmatpush.bf16.msrb.mxu2 %v1966_v18  ;;  %2093 = vmatpush.bf16.msrb.mxu3 %v1969_v59 }
 0x21c   : > { %v1202_v60 = vpop.f32.mrf.mxu2  ;;  %2885 = vrot.lane.b32.xlu1 %v4026_v23, %s3784_s9 }
 0x21d   : > { %v4761_v37 = vadd.f32 %v1202_v60, %v4611_v3  ;;  %v1215_v25 = vpop.f32.mrf.mxu3  ;;  %v1922_v3 = vpop.permute.xlu0 %1921 }
 0x21e   : > { %v4764_v8 = vadd.f32 %v1215_v25, %v4614_v26  ;;  %v1178_v34 = vpop.f32.mrf.mxu0  ;;  %v1361_v11 = vpop.f32.mrf.mxu1  ;;  %v1942_v44 = vsel %vm1927_vm6, %v1922_v3, %v1924_v38 }
 0x21f   : > { %v4772_v49 = vadd.f32 %v1361_v11, %v4622_v16  ;;  %v1938_v16 = vsel %vm1927_vm6, %v1914_v5, %v1916_v22  ;;  %v2228_v63 = vpop.permute.xlu2 %2227  ;;  %v1990_v18 = vsel %vm391_vm1, %v1942_v44, 0  ;;  %v2222_v25 = vpop.permute.xlu1 %2221 }
 0x220   : > { %v1978_v2 = vsel %vm391_vm1, %v1938_v16, 0 }
 0x221   : > { %3456 = vmatmul.msk.bf16.vlgmr.msra.gmra.mxu1 %vm387_vm2, %v4769_v40 }
 0x222   : > { %2119 = vmatpush.bf16.msra.mxu1 %v1975_v30 }
 0x224   : > { %v1204_v26 = vpop.f32.mrf.mxu2  ;;  %2889 = vrot.lane.b32.xlu1 %v4021_v20, %s3784_s9 }
 0x225   : > { %v1217_v53 = vpop.f32.mrf.mxu3 }
 0x226   : > { %v1348_v39 = vpop.f32.mrf.mxu0  ;;  %v1363_v52 = vpop.f32.mrf.mxu1 }
 0x227   : > { %v4785_v57 = vadd.f32 %v1348_v39, %v4633_v43  ;;  %v1920_v43 = vpop.permute.xlu0 %1919  ;;  %v2224_v23 = vpop.permute.xlu2 %2223 }
 0x228   : > { %v1941_v0 = vsel %vm1927_vm6, %v1920_v43, %v1922_v3  ;;  %v2257_v35 = vsel %vm2255_vm7, %v2224_v23, %v2226_v36  ;;  %v2256_v53 = vsel %vm2255_vm7, %v2222_v25, %v2224_v23  ;;  %v2236_v52 = vpop.permute.xlu1 %2235 }
 0x229   : > { %3455 = vmatmul.msk.bf16.vlgmr.msra.gmra.mxu0 %vm387_vm2, %v4769_v40  ;;  %3457 = vmatmul.msk.bf16.vlgmr.msra.gmra.mxu2 %vm387_vm2, %v4769_v40  ;;  %v1987_v7 = vsel %vm391_vm1, %v1941_v0, 0  ;;  %v2279_v3 = vsel %vm391_vm1, %v2257_v35, 0 }
 0x22a   : > { %3458 = vmatmul.msk.bf16.vlgmr.msra.gmra.mxu3 %vm387_vm2, %v4769_v40  ;;  %2106 = vmatpush.bf16.msra.mxu0 %v1972_v56 }
 0x22b   : > { %2132 = vmatpush.bf16.msra.mxu2 %v1978_v2  ;;  %2145 = vmatpush.bf16.msra.mxu3 %v1981_v6 }
 0x22c   : > { %v1374_v32 = vpop.f32.mrf.mxu2  ;;  %2887 = vrot.lane.b32.xlu1 %v4012_v15, %s3784_s9 }
 0x22d   : > { %v4802_v4 = vadd.f32 %v1374_v32, %v4648_v50  ;;  %v1387_v1 = vpop.f32.mrf.mxu3  ;;  %v1940_v50 = vsel %vm1927_vm6, %v1918_v31, %v1920_v43 }
 0x22e   : > { %v4805_v12 = vadd.f32 %v1387_v1, %v4651_v51  ;;  %v1350_v46 = vpop.f32.mrf.mxu0  ;;  %v1413_v13 = vpop.f32.mrf.mxu1  ;;  %v1984_v45 = vsel %vm391_vm1, %v1940_v50, 0 }
 0x22f   : > { %v4808_v5 = vadd.f32 %v1413_v13, %v4654_v14  ;;  %v1943_v14 = vsel %vm1927_vm6, %v1924_v38, %v1926_v58  ;;  %v2230_v22 = vpop.permute.xlu0 %2229  ;;  %v2276_v58 = vsel %vm391_vm1, %v2256_v53, 0  ;;  %v2238_v43 = vpop.permute.xlu2 %2237 }
 0x230   : > { %v1993_v59 = vsel %vm391_vm1, %v1943_v14, 0  ;;  %v2259_v55 = vsel %vm2255_vm7, %v2228_v63, %v2230_v22 }
 0x231   : > { %3460 = vmatmul.msk.bf16.vlgmr.msrb.gmra.mxu1 %vm387_vm2, %v4769_v40  ;;  %v2285_v56 = vsel %vm391_vm1, %v2259_v55, 0 }
 0x232   : > { %2171 = vmatpush.bf16.msrb.mxu1 %v1987_v7  ;;  %v2242_v7 = vpop.permute.xlu1 %2241 }
 0x234   : > { %v1376_v33 = vpop.f32.mrf.mxu2  ;;  %2901 = vrot.lane.b32.xlu1 %v4062_v41, %s3784_s9 }
 0x235   : > { %v1389_v51 = vpop.f32.mrf.mxu3 }
 0x236   : > { %v1400_v10 = vpop.f32.mrf.mxu0  ;;  %v1415_v27 = vpop.f32.mrf.mxu1 }
 0x237   : > { %v4819_v19 = vadd.f32 %v1400_v10, %v4667_v29  ;;  %v2234_v26 = vpop.permute.xlu0 %2233  ;;  %v2244_v44 = vpop.permute.xlu2 %2243 }
 0x239   : > { %3459 = vmatmul.msk.bf16.vlgmr.msrb.gmra.mxu0 %vm387_vm2, %v4769_v40  ;;  %3461 = vmatmul.msk.bf16.vlgmr.msrb.gmra.mxu2 %vm387_vm2, %v4769_v40 }
 0x23a   : > { %3462 = vmatmul.msk.bf16.vlgmr.msrb.gmra.mxu3 %vm387_vm2, %v4769_v40  ;;  %2158 = vmatpush.bf16.msrb.mxu0 %v1984_v45 }
 0x23b   : > { %2184 = vmatpush.bf16.msrb.mxu2 %v1990_v18  ;;  %2197 = vmatpush.bf16.msrb.mxu3 %v1993_v59 }
 0x23c   : > { %v1426_v29 = vpop.f32.mrf.mxu2  ;;  %2907 = vrot.lane.b32.xlu1 %v4064_v42, %s3784_s9  ;;  %v2240_v42 = vpop.permute.xlu1 %2239  ;;  %s3257_s9 = sshll.u32 %s3253_s27, 4  ;;  %s3258_s9 = int_to_ptr.hbm [resolvable:$true] %s3257_s9 }
 0x23d   : > { %v4834_v60 = vadd.f32 %v1426_v29, %v4686_v28  ;;  %v1439_v47 = vpop.f32.mrf.mxu3  ;;  %v2258_v28 = vsel %vm2255_vm7, %v2226_v36, %v2228_v63  ;;  %v2262_v63 = vsel %vm2255_vm7, %v2234_v26, %v2236_v52  ;;  %v2263_v36 = vsel %vm2255_vm7, %v2236_v52, %v2238_v43  ;;  %s3694_s29 = sshra.s32 %s3258_s9, 4  ;;  %s3695_s29 = int_to_ptr.hbm [resolvable:$true] %s3694_s29 }
 0x23e   : > { %v4837_v34 = vadd.f32 %v1439_v47, %v4689_v61  ;;  %v1402_v11 = vpop.f32.mrf.mxu0  ;;  %v1465_v30 = vpop.f32.mrf.mxu1  ;;  %v2282_v39 = vsel %vm391_vm1, %v2258_v28, 0  ;;  %v2294_v14 = vsel %vm391_vm1, %v2262_v63, 0  ;;  %v2297_v10 = vsel %vm391_vm1, %v2263_v36, 0  ;;  %s3696_s11 = scalar_lea.hbm %s3695_s29, 128  ;;  %p3701_p1 = scmp.lt.s32.totalorder %s3695_s29, %s5362_s4 }
 0x23f   : > { %v4840_v31 = vadd.f32 %v1465_v30, %v4692_v48  ;;  %v2232_v15 = vpop.permute.xlu0 %2231  ;;  %v2265_v27 = vsel %vm2255_vm7, %v2240_v42, %v2242_v7  ;;  %v2264_v25 = vsel %vm2255_vm7, %v2238_v43, %v2240_v42  ;;  %v2266_v30 = vsel %vm2255_vm7, %v2242_v7, %v2244_v44  ;;  %p3697_p6 = scmp.ne.s32.totalorder %s3695_s29, %s3696_s11  ;;  %p3702_p2 = scmp.lt.s32.totalorder %s3700_s20, %s3696_s11 }
 0x240   : > { %v2261_v2 = vsel %vm2255_vm7, %v2232_v15, %v2234_v26  ;;  %v2303_v35 = vsel %vm391_vm1, %v2265_v27, 0  ;;  %v2300_v28 = vsel %vm391_vm1, %v2264_v25, 0 }
 0x241   : > { %3464 = vmatmul.msk.bf16.vlgmr.msra.gmra.mxu1 %vm387_vm2, %v4769_v40  ;;  %v2291_v13 = vsel %vm391_vm1, %v2261_v2, 0  ;;  %p3698_p11 = pnand %p3697_p6, %p5384_p9  ;;  %p3703_p3 = por %p3702_p2, %p3701_p1 }
 0x242   : > { %2343 = vmatpush.bf16.msra.mxu1 %v2279_v3 }
 0x243   : > { %p3699_p5 = pneg %p3698_p11 }
 0x244   : > { %v1428_v20 = vpop.f32.mrf.mxu2 }
 0x245   : > { %v1441_v61 = vpop.f32.mrf.mxu3  ;;  %p3704_p8 = pnand %p3703_p3, %p3699_p5 }
 0x246   : > { %v1452_v48 = vpop.f32.mrf.mxu0  ;;  %v1467_v16 = vpop.f32.mrf.mxu1  ;;  %v2306_v61 = vsel %vm391_vm1, %v2266_v30, 0 }
 0x247   : > { %v4851_v54 = vadd.f32 %v1452_v48, %v4707_v21  ;;  %v2246_v47 = vpop.permute.xlu0 %2245 }
 0x248   : > { %v2267_v3 = vsel %vm2255_vm7, %v2244_v44, %v2246_v47 }
 0x249   : > { %3463 = vmatmul.msk.bf16.vlgmr.msra.gmra.mxu0 %vm387_vm2, %v4769_v40  ;;  %3465 = vmatmul.msk.bf16.vlgmr.msra.gmra.mxu2 %vm387_vm2, %v4769_v40  ;;  %v2309_v55 = vsel %vm391_vm1, %v2267_v3, 0 }
 0x24a   : > { %3466 = vmatmul.msk.bf16.vlgmr.msra.gmra.mxu3 %vm387_vm2, %v4769_v40  ;;  %2356 = vmatpush.bf16.msra.mxu2 %v2282_v39 }
 0x24b   : > { %2369 = vmatpush.bf16.msra.mxu3 %v2285_v56  ;;  %2330 = vmatpush.bf16.msra.mxu0 %v2276_v58 }
 0x24c   : > { %v1478_v21 = vpop.f32.mrf.mxu2 }
 0x24d   : > { %v4866_v6 = vadd.f32 %v1478_v21, %v4724_v24  ;;  %v1491_v38 = vpop.f32.mrf.mxu3  ;;  %v2260_v24 = vsel %vm2255_vm7, %v2230_v22, %v2232_v15 }
 0x24e   : > { %v4869_v32 = vadd.f32 %v1491_v38, %v4727_v9  ;;  %v1454_v0 = vpop.f32.mrf.mxu0  ;;  %v1517_v1 = vpop.f32.mrf.mxu1  ;;  %v2288_v51 = vsel %vm391_vm1, %v2260_v24, 0 }
 0x24f   : > { %v4872_v46 = vadd.f32 %v1517_v1, %v4730_v62  ;;  %v2252_v53 = vpop.permute.xlu0 %2251 }
 0x251   : > { %3468 = vmatmul.msk.bf16.vlgmr.msrb.gmra.mxu1 %vm387_vm2, %v4769_v40 }
 0x252   : > { %2395 = vmatpush.bf16.msrb.mxu1 %v2291_v13 }
 0x254   : > { %v1480_v41 = vpop.f32.mrf.mxu2 }
 0x255   : > { %v1493_v9 = vpop.f32.mrf.mxu3  ;;  %v2254_v38 = vpop.permute.xlu1 %2253 }
 0x256   : > { %v1504_v62 = vpop.f32.mrf.mxu0  ;;  %v1519_v33 = vpop.f32.mrf.mxu1  ;;  %v2271_v13 = vsel %vm2255_vm7, %v2252_v53, %v2254_v38 }
 0x257   : > { %v4883_v50 = vadd.f32 %v1504_v62, %v4744_v17  ;;  %v2554_v43 = vpop.permute.xlu0 %2553  ;;  %v2321_v62 = vsel %vm391_vm1, %v2271_v13, 0 }
 0x259   : > { %3467 = vmatmul.msk.bf16.vlgmr.msrb.gmra.mxu0 %vm387_vm2, %v4769_v40  ;;  %3469 = vmatmul.msk.bf16.vlgmr.msrb.gmra.mxu2 %vm387_vm2, %v4769_v40 }
 0x25a   : > { %3470 = vmatmul.msk.bf16.vlgmr.msrb.gmra.mxu3 %vm387_vm2, %v4769_v40  ;;  %2382 = vmatpush.bf16.msrb.mxu0 %v2288_v51  ;;  %v4904_v40 = vld [vmem:[%s5360_s2 + $0x18] sm:$0xf] }
 0x25b   : > { %2408 = vmatpush.bf16.msrb.mxu2 %v2294_v14  ;;  %2421 = vmatpush.bf16.msrb.mxu3 %v2297_v10 }
 0x25c   : > { %v1530_v17 = vpop.f32.mrf.mxu2 }
 0x25d   : > { %v4896_v45 = vadd.f32 %v1530_v17, %v4761_v37  ;;  %v1543_v22 = vpop.f32.mrf.mxu3  ;;  %v2250_v37 = vpop.permute.xlu2 %2249 }
 0x25e   : > { %v4899_v18 = vadd.f32 %v1543_v22, %v4764_v8  ;;  %v1506_v59 = vpop.f32.mrf.mxu0  ;;  %v1689_v23 = vpop.f32.mrf.mxu1 }
 0x25f   : > { %v4907_v29 = vadd.f32 %v1689_v23, %v4772_v49  ;;  %v2556_v63 = vpop.permute.xlu1 %2555  ;;  %v2550_v44 = vpop.permute.xlu0 %2549 }
 0x261   : > { %3473 = vmatmul.msk.bf16.vlgmr.msra.gmra.mxu1 %vm387_vm2, %v4904_v40 }
 0x262   : > { %2447 = vmatpush.bf16.msra.mxu1 %v2303_v35  ;;  %v2586_v35 = vsel %vm2583_vm8, %v2554_v43, %v2556_v63 }
 0x264   : > { %v1532_v8 = vpop.f32.mrf.mxu2 }
 0x265   : > { %v1545_v11 = vpop.f32.mrf.mxu3  ;;  %v2248_v48 = vpop.permute.xlu2 %2247 }
 0x266   : > { %v1676_v26 = vpop.f32.mrf.mxu0  ;;  %v1691_v20 = vpop.f32.mrf.mxu1  ;;  %v2269_v16 = vsel %vm2255_vm7, %v2248_v48, %v2250_v37  ;;  %v2610_v11 = vsel %vm391_vm1, %v2586_v35, 0 }
 0x267   : > { %v4916_v49 = vadd.f32 %v1676_v26, %v4785_v57  ;;  %v2315_v2 = vsel %vm391_vm1, %v2269_v16, 0  ;;  %v2552_v27 = vpop.permute.xlu1 %2551  ;;  %v2564_v30 = vpop.permute.xlu0 %2563 }
 0x268   : > { %v2585_v22 = vsel %vm2583_vm8, %v2552_v27, %v2554_v43 }
 0x269   : > { %3472 = vmatmul.msk.bf16.vlgmr.msra.gmra.mxu0 %vm387_vm2, %v4904_v40  ;;  %3474 = vmatmul.msk.bf16.vlgmr.msra.gmra.mxu2 %vm387_vm2, %v4904_v40 }
 0x26a   : > { %3475 = vmatmul.msk.bf16.vlgmr.msra.gmra.mxu3 %vm387_vm2, %v4904_v40  ;;  %2434 = vmatpush.bf16.msra.mxu0 %v2300_v28 }
 0x26b   : > { %2460 = vmatpush.bf16.msra.mxu2 %v2306_v61  ;;  %2473 = vmatpush.bf16.msra.mxu3 %v2309_v55 }
 0x26c   : > { %v1702_v57 = vpop.f32.mrf.mxu2 }
 0x26d   : > { %v4929_v39 = vadd.f32 %v1702_v57, %v4802_v4  ;;  %v1715_v52 = vpop.f32.mrf.mxu3  ;;  %v2268_v4 = vsel %vm2255_vm7, %v2246_v47, %v2248_v48  ;;  %v2558_v9 = vpop.permute.xlu2 %2557 }
 0x26e   : > { %v4932_v56 = vadd.f32 %v1715_v52, %v4805_v12  ;;  %v1678_v58 = vpop.f32.mrf.mxu0  ;;  %v1741_v15 = vpop.f32.mrf.mxu1  ;;  %v2270_v12 = vsel %vm2255_vm7, %v2250_v37, %v2252_v53  ;;  %v2312_v24 = vsel %vm391_vm1, %v2268_v4, 0  ;;  %v2587_v47 = vsel %vm2583_vm8, %v2556_v63, %v2558_v9 }
 0x26f   : > { %v4935_v21 = vadd.f32 %v1741_v15, %v4808_v5  ;;  %v2318_v36 = vsel %vm391_vm1, %v2270_v12, 0  ;;  %v2584_v37 = vsel %vm2583_vm8, %v2550_v44, %v2552_v27  ;;  %v2613_v3 = vsel %vm391_vm1, %v2587_v47, 0  ;;  %v2566_v53 = vpop.permute.xlu1 %2565  ;;  %v2570_v15 = vpop.permute.xlu0 %2569 }
 0x270   : > { %v2604_v26 = vsel %vm391_vm1, %v2584_v37, 0 }
 0x271   : > { %3477 = vmatmul.msk.bf16.vlgmr.msrb.gmra.mxu1 %vm387_vm2, %v4904_v40 }
 0x272   : > { %2499 = vmatpush.bf16.msrb.mxu1 %v2315_v2 }
 0x274   : > { %v1704_v0 = vpop.f32.mrf.mxu2 }
 0x275   : > { %v1717_v1 = vpop.f32.mrf.mxu3  ;;  %v2562_v59 = vpop.permute.xlu2 %2561 }
 0x276   : > { %v1728_v7 = vpop.f32.mrf.mxu0  ;;  %v1743_v41 = vpop.f32.mrf.mxu1  ;;  %v2590_v43 = vsel %vm2583_vm8, %v2562_v59, %v2564_v30 }
 0x277   : > { %v4944_v5 = vadd.f32 %v1728_v7, %v4819_v19  ;;  %v2572_v12 = vpop.permute.xlu1 %2571  ;;  %v2622_v13 = vsel %vm391_vm1, %v2590_v43, 0  ;;  %v2568_v41 = vpop.permute.xlu0 %2567 }
 0x279   : > { %3476 = vmatmul.msk.bf16.vlgmr.msrb.gmra.mxu0 %vm387_vm2, %v4904_v40  ;;  %3478 = vmatmul.msk.bf16.vlgmr.msrb.gmra.mxu2 %vm387_vm2, %v4904_v40 }
 0x27a   : > { %3479 = vmatmul.msk.bf16.vlgmr.msrb.gmra.mxu3 %vm387_vm2, %v4904_v40  ;;  %2486 = vmatpush.bf16.msrb.mxu0 %v2312_v24  ;;  %v2593_v24 = vsel %vm2583_vm8, %v2568_v41, %v2570_v15 }
 0x27b   : > { %2512 = vmatpush.bf16.msrb.mxu2 %v2318_v36  ;;  %2525 = vmatpush.bf16.msrb.mxu3 %v2321_v62  ;;  %v2631_v44 = vsel %vm391_vm1, %v2593_v24, 0 }
 0x27c   : > { %v1754_v19 = vpop.f32.mrf.mxu2 }
 0x27d   : > { %v4956_v33 = vadd.f32 %v1754_v19, %v4834_v60  ;;  %v1767_v51 = vpop.f32.mrf.mxu3  ;;  %v2607_v60 = vsel %vm391_vm1, %v2585_v22, 0  ;;  %v2560_v20 = vpop.permute.xlu2 %2559  ;;  %v2594_v22 = vsel %vm2583_vm8, %v2570_v15, %v2572_v12 }
 0x27e   : > { %v4959_v14 = vadd.f32 %v1767_v51, %v4837_v34  ;;  %v1730_v10 = vpop.f32.mrf.mxu0  ;;  %v1793_v42 = vpop.f32.mrf.mxu1  ;;  %v2589_v28 = vsel %vm2583_vm8, %v2560_v20, %v2562_v59  ;;  %v2634_v47 = vsel %vm391_vm1, %v2594_v22, 0 }
 0x27f   : > { %v4962_v17 = vadd.f32 %v1793_v42, %v4840_v31  ;;  %v2619_v58 = vsel %vm391_vm1, %v2589_v28, 0  ;;  %v2592_v42 = vsel %vm2583_vm8, %v2566_v53, %v2568_v41 }
 0x280   : > { %v2628_v35 = vsel %vm391_vm1, %v2592_v42, 0 }
 0x281   : > { %3481 = vmatmul.msk.bf16.vlgmr.msra.gmra.mxu1 %vm387_vm2, %v4904_v40 }
 0x282   : > { %2671 = vmatpush.bf16.msra.mxu1 %v2607_v60 }
 0x284   : > { %v1756_v23 = vpop.f32.mrf.mxu2 }
 0x285   : > { %v1769_v34 = vpop.f32.mrf.mxu3  ;;  %v2574_v10 = vpop.permute.xlu2 %2573 }
 0x286   : > { %v1780_v31 = vpop.f32.mrf.mxu0  ;;  %v1795_v8 = vpop.f32.mrf.mxu1  ;;  %v2595_v59 = vsel %vm2583_vm8, %v2572_v12, %v2574_v10 }
 0x287   : > { %v4972_v25 = vadd.f32 %v1780_v31, %v4851_v54  ;;  %v2582_v34 = vpop.permute.xlu0 %2581  ;;  %v2637_v37 = vsel %vm391_vm1, %v2595_v59, 0 }
 0x289   : > { %3482 = vmatmul.msk.bf16.vlgmr.msra.gmra.mxu2 %vm387_vm2, %v4904_v40  ;;  %3480 = vmatmul.msk.bf16.vlgmr.msra.gmra.mxu0 %vm387_vm2, %v4904_v40 }
 0x28a   : > { %3483 = vmatmul.msk.bf16.vlgmr.msra.gmra.mxu3 %vm387_vm2, %v4904_v40  ;;  %2684 = vmatpush.bf16.msra.mxu2 %v2610_v11 }
 0x28b   : > { %2697 = vmatpush.bf16.msra.mxu3 %v2613_v3  ;;  %2658 = vmatpush.bf16.msra.mxu0 %v2604_v26 }
 0x28c   : > { %v1806_v54 = vpop.f32.mrf.mxu2 }
 0x28d   : > { %v4985_v61 = vadd.f32 %v1806_v54, %v4866_v6  ;;  %v1819_v55 = vpop.f32.mrf.mxu3  ;;  %v2588_v6 = vsel %vm2583_vm8, %v2558_v9, %v2560_v20  ;;  %v2580_v31 = vpop.permute.xlu2 %2579 }
 0x28e   : > { %v4988_v48 = vadd.f32 %v1819_v55, %v4869_v32  ;;  %v1782_v57 = vpop.f32.mrf.mxu0  ;;  %v1845_v16 = vpop.f32.mrf.mxu1  ;;  %v2591_v32 = vsel %vm2583_vm8, %v2564_v30, %v2566_v53  ;;  %v2616_v1 = vsel %vm391_vm1, %v2588_v6, 0  ;;  %v2599_v15 = vsel %vm2583_vm8, %v2580_v31, %v2582_v34 }
 0x28f   : > { %v4991_v52 = vadd.f32 %v1845_v16, %v4872_v46  ;;  %v2625_v7 = vsel %vm391_vm1, %v2591_v32, 0  ;;  %v2884_v53 = vpop.permute.xlu0 %2883 }
 0x291   : > { %3485 = vmatmul.msk.bf16.vlgmr.msrb.gmra.mxu1 %vm387_vm2, %v4904_v40 }
 0x292   : > { %2723 = vmatpush.bf16.msrb.mxu1 %v2619_v58 }
 0x294   : > { %v1808_v2 = vpop.f32.mrf.mxu2 }
 0x295   : > { %v1821_v38 = vpop.f32.mrf.mxu3  ;;  %v2882_v57 = vpop.permute.xlu2 %2881 }
 0x296   : > { %v1832_v0 = vpop.f32.mrf.mxu0  ;;  %v1847_v4 = vpop.f32.mrf.mxu1 }
 0x297   : > { %v5000_v46 = vadd.f32 %v1832_v0, %v4883_v50  ;;  %v2649_v0 = vsel %vm391_vm1, %v2599_v15, 0  ;;  %v2880_v4 = vpop.permute.xlu0 %2879 }
 0x299   : > { %3486 = vmatmul.msk.bf16.vlgmr.msrb.gmra.mxu2 %vm387_vm2, %v4904_v40  ;;  %3484 = vmatmul.msk.bf16.vlgmr.msrb.gmra.mxu0 %vm387_vm2, %v4904_v40 }
 0x29a   : > { %3487 = vmatmul.msk.bf16.vlgmr.msrb.gmra.mxu3 %vm387_vm2, %v4904_v40  ;;  %2710 = vmatpush.bf16.msrb.mxu0 %v2616_v1  ;;  %v5021_v40 = vld [vmem:[%s5360_s2 + $0x1c] sm:$0xf]  ;;  %v2913_v1 = vsel %vm2911_vm9, %v2880_v4, %v2882_v57 }
 0x29b   : > { %2736 = vmatpush.bf16.msrb.mxu2 %v2622_v13  ;;  %2749 = vmatpush.bf16.msrb.mxu3 %v2625_v7 }
 0x29c   : > { %v1858_v50 = vpop.f32.mrf.mxu2 }
 0x29d   : > { %v5013_v9 = vadd.f32 %v1858_v50, %v4896_v45  ;;  %v1871_v63 = vpop.f32.mrf.mxu3  ;;  %v2578_v45 = vpop.permute.xlu1 %2577 }
 0x29e   : > { %v5016_v36 = vadd.f32 %v1871_v63, %v4899_v18  ;;  %v1834_v62 = vpop.f32.mrf.mxu0  ;;  %v2017_v19 = vpop.f32.mrf.mxu1 }
 0x29f   : > { %v5024_v51 = vadd.f32 %v2017_v19, %v4907_v29  ;;  %v2878_v7 = vpop.permute.xlu2 %2877  ;;  %v2935_v62 = vsel %vm391_vm1, %v2913_v1, 0 }
 0x2a1   : > { %3490 = vmatmul.msk.bf16.vlgmr.msra.gmra.mxu1 %vm387_vm2, %v5021_v40 }
 0x2a2   : > { %2775 = vmatpush.bf16.msra.mxu1 %v2631_v44 }
 0x2a4   : > { %v1860_v18 = vpop.f32.mrf.mxu2 }
 0x2a5   : > { %v1873_v27 = vpop.f32.mrf.mxu3 }
 0x2a6   : > { %v2004_v60 = vpop.f32.mrf.mxu0  ;;  %v2019_v23 = vpop.f32.mrf.mxu1 }
 0x2a7   : > { %v5033_v29 = vadd.f32 %v2004_v60, %v4916_v49  ;;  %v2576_v49 = vpop.permute.xlu1 %2575  ;;  %v2892_v22 = vpop.permute.xlu2 %2891 }
 0x2a8   : > { %v2597_v11 = vsel %vm2583_vm8, %v2576_v49, %v2578_v45 }
 0x2a9   : > { %3489 = vmatmul.msk.bf16.vlgmr.msra.gmra.mxu0 %vm387_vm2, %v5021_v40  ;;  %3491 = vmatmul.msk.bf16.vlgmr.msra.gmra.mxu2 %vm387_vm2, %v5021_v40  ;;  %v2643_v55 = vsel %vm391_vm1, %v2597_v11, 0  ;;  %v3785_v11 = vmov 0  }
 0x2aa   : > { %3492 = vmatmul.msk.bf16.vlgmr.msra.gmra.mxu3 %vm387_vm2, %v5021_v40  ;;  %2762 = vmatpush.bf16.msra.mxu0 %v2628_v35 }
 0x2ab   : > { %2788 = vmatpush.bf16.msra.mxu2 %v2634_v47  ;;  %2801 = vmatpush.bf16.msra.mxu3 %v2637_v37  ;;  %v2894_v37 = vpop.permute.xlu0 %2893 }
 0x2ac   : > { %v2030_v8 = vpop.f32.mrf.mxu2  ;;  %3610 = vset.pattern.permute.xlu1 %v3785_v11  ;;  %3611 = vset.pattern.permute.xlu0 %v3785_v11 }
 0x2ad   : > { %v5046_v30 = vadd.f32 %v2030_v8, %v4929_v39  ;;  %v2043_v3 = vpop.f32.mrf.mxu3  ;;  %v2596_v39 = vsel %vm2583_vm8, %v2574_v10, %v2576_v49 }
 0x2ae   : > { %v5049_v26 = vadd.f32 %v2043_v3, %v4932_v56  ;;  %v2006_v20 = vpop.f32.mrf.mxu0  ;;  %v2069_v54 = vpop.f32.mrf.mxu1  ;;  %v2598_v56 = vsel %vm2583_vm8, %v2578_v45, %v2580_v31  ;;  %v2640_v38 = vsel %vm391_vm1, %v2596_v39, 0  ;;  %v2912_v45 = vsel %vm2911_vm9, %v2878_v7, %v2880_v4  ;;  %v3203_v3 = vld [vmem:[%s5361_s3] sm:$0xff] }
 0x2af   : > { %v5052_v28 = vadd.f32 %v2069_v54, %v4935_v21  ;;  %v5064_v43 = vpop.permute.xlu1 %2885  ;;  %v2646_v32 = vsel %vm391_vm1, %v2598_v56, 0  ;;  %v2932_v60 = vsel %vm391_vm1, %v2912_v45, 0  ;;  %3206 = vperm.xlu1 %3610, %v3203_v3  }
 0x2b1   : > { %3494 = vmatmul.msk.bf16.vlgmr.msrb.gmra.mxu1 %vm387_vm2, %v5021_v40 }
 0x2b2   : > { %2827 = vmatpush.bf16.msrb.mxu1 %v2643_v55 }
 0x2b3   : > { %v2900_v15 = vpop.permute.xlu0 %2899 }
 0x2b4   : > { %v2032_v16 = vpop.f32.mrf.mxu2 }
 0x2b5   : > { %v2045_v58 = vpop.f32.mrf.mxu3  ;;  %v2919_v16 = vsel %vm2911_vm9, %v2892_v22, %v2894_v37 }
 0x2b6   : > { %v2056_v2 = vpop.f32.mrf.mxu0  ;;  %v2071_v6 = vpop.f32.mrf.mxu1 }
 0x2b7   : > { %v5061_v21 = vadd.f32 %v2056_v2, %v4944_v5  ;;  %v2890_v19 = vpop.permute.xlu1 %2889  ;;  %v2953_v6 = vsel %vm391_vm1, %v2919_v16, 0 }
 0x2b9   : > { %3493 = vmatmul.msk.bf16.vlgmr.msrb.gmra.mxu0 %vm387_vm2, %v5021_v40  ;;  %3495 = vmatmul.msk.bf16.vlgmr.msrb.gmra.mxu2 %vm387_vm2, %v5021_v40 }
 0x2ba   : > { %3496 = vmatmul.msk.bf16.vlgmr.msrb.gmra.mxu3 %vm387_vm2, %v5021_v40  ;;  %2814 = vmatpush.bf16.msrb.mxu0 %v2640_v38 }
 0x2bb   : > { %2840 = vmatpush.bf16.msrb.mxu2 %v2646_v32  ;;  %2853 = vmatpush.bf16.msrb.mxu3 %v2649_v0 }
 0x2bc   : > { %v2082_v5 = vpop.f32.mrf.mxu2 }
 0x2bd   : > { %v5076_v12 = vadd.f32 %v2082_v5, %v4956_v33  ;;  %v2095_v13 = vpop.f32.mrf.mxu3  ;;  %v2914_v33 = vsel %vm2911_vm9, %v2882_v57, %v2884_v53  ;;  %v2918_v57 = vsel %vm2911_vm9, %v2890_v19, %v2892_v22 }
 0x2be   : > { %v5079_v41 = vadd.f32 %v2095_v13, %v4959_v14  ;;  %v2058_v50 = vpop.f32.mrf.mxu0  ;;  %v2121_v24 = vpop.f32.mrf.mxu1  ;;  %v2915_v14 = vsel %vm2911_vm9, %v2884_v53, %v5064_v43  ;;  %v2938_v27 = vsel %vm391_vm1, %v2914_v33, 0  ;;  %v2950_v2 = vsel %vm391_vm1, %v2918_v57, 0 }
 0x2bf   : > { %v5082_v63 = vadd.f32 %v2121_v24, %v4962_v17  ;;  %v2941_v59 = vsel %vm391_vm1, %v2915_v14, 0  ;;  %v2888_v23 = vpop.permute.xlu1 %2887 }
 0x2c0   : > { %v2917_v35 = vsel %vm2911_vm9, %v2888_v23, %v2890_v19  ;;  %v2916_v55 = vsel %vm2911_vm9, %v5064_v43, %v2888_v23 }
 0x2c1   : > { %3498 = vmatmul.msk.bf16.vlgmr.msra.gmra.mxu1 %vm387_vm2, %v5021_v40  ;;  %v2944_v56 = vsel %vm391_vm1, %v2916_v55, 0 }
 0x2c2   : > { %2999 = vmatpush.bf16.msra.mxu1 %v2935_v62 }
 0x2c4   : > { %v2084_v44 = vpop.f32.mrf.mxu2 }
 0x2c5   : > { %v2097_v10 = vpop.f32.mrf.mxu3 }
 0x2c6   : > { %v2108_v18 = vpop.f32.mrf.mxu0  ;;  %v2123_v42 = vpop.f32.mrf.mxu1 }
 0x2c7   : > { %v5092_v17 = vadd.f32 %v2108_v18, %v4972_v25  ;;  %v2902_v50 = vpop.permute.xlu1 %2901 }
 0x2c8   : > { %v2923_v44 = vsel %vm2911_vm9, %v2900_v15, %v2902_v50 }
 0x2c9   : > { %3497 = vmatmul.msk.bf16.vlgmr.msra.gmra.mxu0 %vm387_vm2, %v5021_v40  ;;  %3499 = vmatmul.msk.bf16.vlgmr.msra.gmra.mxu2 %vm387_vm2, %v5021_v40  ;;  %v2965_v18 = vsel %vm391_vm1, %v2923_v44, 0 }
 0x2ca   : > { %3500 = vmatmul.msk.bf16.vlgmr.msra.gmra.mxu3 %vm387_vm2, %v5021_v40  ;;  %3012 = vmatpush.bf16.msra.mxu2 %v2938_v27 }
 0x2cb   : > { %3025 = vmatpush.bf16.msra.mxu3 %v2941_v59  ;;  %2986 = vmatpush.bf16.msra.mxu0 %v2932_v60 }
 0x2cc   : > { %v2134_v25 = vpop.f32.mrf.mxu2 }
 0x2cd   : > { %v5105_v34 = vadd.f32 %v2134_v25, %v4985_v61  ;;  %v2147_v47 = vpop.f32.mrf.mxu3  ;;  %v2947_v61 = vsel %vm391_vm1, %v2917_v35, 0 }
 0x2ce   : > { %v5108_v31 = vadd.f32 %v2147_v47, %v4988_v48  ;;  %v2110_v49 = vpop.f32.mrf.mxu0  ;;  %v2173_v8 = vpop.f32.mrf.mxu1 }
 0x2cf   : > { %v5114_v20 = vadd.f32 %v2173_v8, %v4991_v52  ;;  %v2898_v48 = vpop.permute.xlu2 %2897 }
 0x2d0   : > { %v2922_v19 = vsel %vm2911_vm9, %v2898_v48, %v2900_v15 }
 0x2d1   : > { %3502 = vmatmul.msk.bf16.vlgmr.msrb.gmra.mxu1 %vm387_vm2, %v5021_v40  ;;  %v2962_v45 = vsel %vm391_vm1, %v2922_v19, 0 }
 0x2d2   : > { %3051 = vmatpush.bf16.msrb.mxu1 %v2947_v61 }
 0x2d4   : > { %v2136_v54 = vpop.f32.mrf.mxu2 }
 0x2d5   : > { %v2149_v53 = vpop.f32.mrf.mxu3 }
 0x2d6   : > { %v2160_v39 = vpop.f32.mrf.mxu0  ;;  %v2175_v52 = vpop.f32.mrf.mxu1 }
 0x2d7   : > { %v5124_v58 = vadd.f32 %v2160_v39, %v5000_v46  ;;  %v2896_v38 = vpop.permute.xlu2 %2895 }
 0x2d8   : > { %v2921_v43 = vsel %vm2911_vm9, %v2896_v38, %v2898_v48  ;;  %v2920_v24 = vsel %vm2911_vm9, %v2894_v37, %v2896_v38  ;;  %v2908_v37 = vpop.permute.xlu1 %2907 }
 0x2d9   : > { %3501 = vmatmul.msk.bf16.vlgmr.msrb.gmra.mxu0 %vm387_vm2, %v5021_v40  ;;  %3503 = vmatmul.msk.bf16.vlgmr.msrb.gmra.mxu2 %vm387_vm2, %v5021_v40  ;;  %v2959_v7 = vsel %vm391_vm1, %v2921_v43, 0  ;;  %v2956_v14 = vsel %vm391_vm1, %v2920_v24, 0 }
 0x2da   : > { %3504 = vmatmul.msk.bf16.vlgmr.msrb.gmra.mxu3 %vm387_vm2, %v5021_v40  ;;  %3038 = vmatpush.bf16.msrb.mxu0 %v2944_v56  ;;  %v5145_v40 = vld [vmem:[%s5360_s2 + $0x20] sm:$0xf] }
 0x2db   : > { %3064 = vmatpush.bf16.msrb.mxu2 %v2950_v2  ;;  %3077 = vmatpush.bf16.msrb.mxu3 %v2953_v6 }
 0x2dc   : > { %v2186_v46 = vpop.f32.mrf.mxu2 }
 0x2dd   : > { %v5137_v32 = vadd.f32 %v2186_v46, %v5013_v9  ;;  %v2199_v0 = vpop.f32.mrf.mxu3  ;;  %v2906_v9 = vpop.permute.xlu0 %2905 }
 0x2de   : > { %v5140_v4 = vadd.f32 %v2199_v0, %v5016_v36  ;;  %v2162_v5 = vpop.f32.mrf.mxu0  ;;  %v2345_v1 = vpop.f32.mrf.mxu1 }
 0x2df   : > { %v5148_v13 = vadd.f32 %v2345_v1, %v5024_v51  ;;  %v2910_v49 = vpop.permute.xlu2 %2909 }
 0x2e0   : > { %v2927_v3 = vsel %vm2911_vm9, %v2908_v37, %v2910_v49 }
 0x2e1   : > { %3507 = vmatmul.msk.bf16.vlgmr.msra.gmra.mxu1 %vm387_vm2, %v5145_v40  ;;  %v2977_v53 = vsel %vm391_vm1, %v2927_v3, 0 }
 0x2e2   : > { %3103 = vmatpush.bf16.msra.mxu1 %v2959_v7 }
 0x2e4   : > { %v2188_v36 = vpop.f32.mrf.mxu2 }
 0x2e5   : > { %v2201_v62 = vpop.f32.mrf.mxu3  ;;  %v2904_v42 = vpop.permute.xlu0 %2903 }
 0x2e6   : > { %v2332_v33 = vpop.f32.mrf.mxu0  ;;  %v2347_v10 = vpop.f32.mrf.mxu1  ;;  %v2925_v27 = vsel %vm2911_vm9, %v2904_v42, %v2906_v9 }
 0x2e7   : > { %v5157_v51 = vadd.f32 %v2332_v33, %v5033_v29  ;;  %v2971_v47 = vsel %vm391_vm1, %v2925_v27, 0 }
 0x2e9   : > { %3506 = vmatmul.msk.bf16.vlgmr.msra.gmra.mxu0 %vm387_vm2, %v5145_v40  ;;  %3508 = vmatmul.msk.bf16.vlgmr.msra.gmra.mxu2 %vm387_vm2, %v5145_v40 }
 0x2ea   : > { %3509 = vmatmul.msk.bf16.vlgmr.msra.gmra.mxu3 %vm387_vm2, %v5145_v40  ;;  %3090 = vmatpush.bf16.msra.mxu0 %v2956_v14 }
 0x2eb   : > { %3116 = vmatpush.bf16.msra.mxu2 %v2962_v45  ;;  %3129 = vmatpush.bf16.msra.mxu3 %v2965_v18 }
 0x2ec   : > { %v2358_v29 = vpop.f32.mrf.mxu2 }
 0x2ed   : > { %v5170_v22 = vadd.f32 %v2358_v29, %v5046_v30  ;;  %v2371_v59 = vpop.f32.mrf.mxu3  ;;  %v2924_v30 = vsel %vm2911_vm9, %v2902_v50, %v2904_v42 }
 0x2ee   : > { %v5173_v60 = vadd.f32 %v2371_v59, %v5049_v26  ;;  %v2334_v23 = vpop.f32.mrf.mxu0  ;;  %v2397_v25 = vpop.f32.mrf.mxu1  ;;  %v2926_v26 = vsel %vm2911_vm9, %v2906_v9, %v2908_v37  ;;  %v2968_v54 = vsel %vm391_vm1, %v2924_v30, 0 }
 0x2ef   : > { %v5176_v35 = vadd.f32 %v2397_v25, %v5052_v28  ;;  %v2974_v55 = vsel %vm391_vm1, %v2926_v26, 0 }
 0x2f1   : > { %3511 = vmatmul.msk.bf16.vlgmr.msrb.gmra.mxu1 %vm387_vm2, %v5145_v40 }
 0x2f2   : > { %3155 = vmatpush.bf16.msrb.mxu1 %v2971_v47 }
 0x2f4   : > { %v2360_v8 = vpop.f32.mrf.mxu2 }
 0x2f5   : > { %v2373_v11 = vpop.f32.mrf.mxu3 }
 0x2f6   : > { %v2384_v61 = vpop.f32.mrf.mxu0  ;;  %v2399_v48 = vpop.f32.mrf.mxu1 }
 0x2f7   : > { %v5185_v28 = vadd.f32 %v2384_v61, %v5061_v21 }
 0x2f9   : > { %3510 = vmatmul.msk.bf16.vlgmr.msrb.gmra.mxu0 %vm387_vm2, %v5145_v40  ;;  %3512 = vmatmul.msk.bf16.vlgmr.msrb.gmra.mxu2 %vm387_vm2, %v5145_v40 }
 0x2fa   : > { %3513 = vmatmul.msk.bf16.vlgmr.msrb.gmra.mxu3 %vm387_vm2, %v5145_v40  ;;  %3142 = vmatpush.bf16.msrb.mxu0 %v2968_v54 }
 0x2fb   : > { %3168 = vmatpush.bf16.msrb.mxu2 %v2974_v55  ;;  %3181 = vmatpush.bf16.msrb.mxu3 %v2977_v53 }
 0x2fc   : > { %v2410_v21 = vpop.f32.mrf.mxu2 }
 0x2fd   : > { %v5197_v57 = vadd.f32 %v2410_v21, %v5076_v12  ;;  %v2423_v16 = vpop.f32.mrf.mxu3 }
 0x2fe   : > { %v5200_v39 = vadd.f32 %v2423_v16, %v5079_v41  ;;  %v2386_v52 = vpop.f32.mrf.mxu0  ;;  %v2449_v56 = vpop.f32.mrf.mxu1 }
 0x2ff   : > { %v5203_v15 = vadd.f32 %v2449_v56, %v5082_v63 }
 0x301   : > { %3515 = vmatmul.msk.bf16.vlgmr.msra.gmra.mxu1 %vm387_vm2, %v5145_v40 }
 0x304   : > { %v2412_v2 = vpop.f32.mrf.mxu2 }
 0x305   : > { %v2425_v6 = vpop.f32.mrf.mxu3 }
 0x306   : > { %v2436_v38 = vpop.f32.mrf.mxu0  ;;  %v2451_v46 = vpop.f32.mrf.mxu1 }
 0x307   : > { %v5208_v43 = vadd.f32 %v2436_v38, %v5092_v17 }
 0x309   : > { %3516 = vmatmul.msk.bf16.vlgmr.msra.gmra.mxu2 %vm387_vm2, %v5145_v40  ;;  %3514 = vmatmul.msk.bf16.vlgmr.msra.gmra.mxu0 %vm387_vm2, %v5145_v40 }
 0x30a   : > { %3517 = vmatmul.msk.bf16.vlgmr.msra.gmra.mxu3 %vm387_vm2, %v5145_v40 }
 0x30c   : > { %v2462_v12 = vpop.f32.mrf.mxu2 }
 0x30d   : > { %v5217_v41 = vadd.f32 %v2462_v12, %v5105_v34  ;;  %v2475_v63 = vpop.f32.mrf.mxu3 }
 0x30e   : > { %v5220_v0 = vadd.f32 %v2475_v63, %v5108_v31  ;;  %v2438_v5 = vpop.f32.mrf.mxu0  ;;  %v2501_v17 = vpop.f32.mrf.mxu1 }
 0x30f   : > { %v5223_v1 = vadd.f32 %v2501_v17, %v5114_v20 }
 0x311   : > { %3519 = vmatmul.msk.bf16.vlgmr.msrb.gmra.mxu1 %vm387_vm2, %v5145_v40 }
 0x314   : > { %v2464_v7 = vpop.f32.mrf.mxu2 }
 0x315   : > { %v2477_v9 = vpop.f32.mrf.mxu3 }
 0x316   : > { %v2488_v50 = vpop.f32.mrf.mxu0  ;;  %v2503_v36 = vpop.f32.mrf.mxu1 }
 0x317   : > { %v5228_v24 = vadd.f32 %v2488_v50, %v5124_v58 }
 0x319   : > { %3518 = vmatmul.msk.bf16.vlgmr.msrb.gmra.mxu0 %vm387_vm2, %v5145_v40  ;;  %3520 = vmatmul.msk.bf16.vlgmr.msrb.gmra.mxu2 %vm387_vm2, %v5145_v40 }
 0x31a   : > { %3521 = vmatmul.msk.bf16.vlgmr.msrb.gmra.mxu3 %vm387_vm2, %v5145_v40 }
 0x31c   : > { %v2514_v34 = vpop.f32.mrf.mxu2 }
 0x31d   : > { %v5237_v31 = vadd.f32 %v2514_v34, %v5137_v32  ;;  %v2527_v20 = vpop.f32.mrf.mxu3 }
 0x31e   : > { %v5240_v62 = vadd.f32 %v2527_v20, %v5140_v4  ;;  %v2490_v19 = vpop.f32.mrf.mxu0  ;;  %v2673_v58 = vpop.f32.mrf.mxu1 }
 0x31f   : > { %v2860_v16 = vadd.f32 %v2673_v58, %v5148_v13 }
 0x321   : > { %v5258_v56 = vpop.permute.xlu1 %3206 }
 0x324   : > { %v2516_v44 = vpop.f32.mrf.mxu2 }
 0x325   : > { %v2529_v33 = vpop.f32.mrf.mxu3 }
 0x326   : > { %v2660_v10 = vpop.f32.mrf.mxu0  ;;  %v2675_v14 = vpop.f32.mrf.mxu1 }
 0x327   : > { %v2859_v63 = vadd.f32 %v2660_v10, %v5157_v51 }
 0x32c   : > { %v2686_v45 = vpop.f32.mrf.mxu2 }
 0x32d   : > { %v2699_v18 = vpop.f32.mrf.mxu3  ;;  %v2861_v50 = vadd.f32 %v2686_v45, %v5170_v22 }
 0x32e   : > { %v2662_v42 = vpop.f32.mrf.mxu0  ;;  %v2725_v29 = vpop.f32.mrf.mxu1  ;;  %v2862_v36 = vadd.f32 %v2699_v18, %v5173_v60 }
 0x32f   : > { %v2864_v20 = vadd.f32 %v2725_v29, %v5176_v35 }
 0x334   : > { %v2688_v27 = vpop.f32.mrf.mxu2 }
 0x335   : > { %v2701_v40 = vpop.f32.mrf.mxu3 }
 0x336   : > { %v2712_v59 = vpop.f32.mrf.mxu0  ;;  %v2727_v23 = vpop.f32.mrf.mxu1 }
 0x337   : > { %v2863_v45 = vadd.f32 %v2712_v59, %v5185_v28 }
 0x33c   : > { %v2738_v32 = vpop.f32.mrf.mxu2 }
 0x33d   : > { %v2751_v25 = vpop.f32.mrf.mxu3  ;;  %v2865_v23 = vadd.f32 %v2738_v32, %v5197_v57 }
 0x33e   : > { %v2714_v47 = vpop.f32.mrf.mxu0  ;;  %v2777_v37 = vpop.f32.mrf.mxu1 }
 0x33f   : > { %v2866_v47 = vadd.f32 %v2751_v25, %v5200_v39 }
 0x344   : > { %v2740_v4 = vpop.f32.mrf.mxu2 }
 0x345   : > { %v2753_v49 = vpop.f32.mrf.mxu3 }
 0x346   : > { %v5242_v8 = vpop.f32.mrf.mxu0  ;;  %v2779_v30 = vpop.f32.mrf.mxu1  ;;  %v2868_v49 = vadd.f32 %v2777_v37, %v5203_v15 }
 0x347   : > { %v2867_v15 = vadd.f32 %v5242_v8, %v5208_v43 }
 0x34c   : > { %v5244_v11 = vpop.f32.mrf.mxu2 }
 0x34d   : > { %v5246_v26 = vpop.f32.mrf.mxu3 }
 0x34e   : > { %v2766_v3 = vpop.f32.mrf.mxu0  ;;  %v5248_v61 = vpop.f32.mrf.mxu1 }
 0x34f   : > { %v2872_v43 = vadd.f32 %v5248_v61, %v5223_v1 }
 0x354   : > { %v2792_v48 = vpop.f32.mrf.mxu2 }
 0x355   : > { %v2805_v54 = vpop.f32.mrf.mxu3 }
 0x356   : > { %v5250_v55 = vpop.f32.mrf.mxu0  ;;  %v2831_v53 = vpop.f32.mrf.mxu1 }
 0x357   : > { %v2871_v1 = vadd.f32 %v5250_v55, %v5228_v24 }
 0x35c   : > { %v5252_v21 = vpop.f32.mrf.mxu2 }
 0x35d   : > { %v5255_v52 = vpop.f32.mrf.mxu3 }
 0x35e   : > { %v2818_v2 = vpop.f32.mrf.mxu0  ;;  %v3001_v6 = vpop.f32.mrf.mxu1  ;;  %v2874_v24 = vadd.f32 %v5255_v52, %v5240_v62 }
 0x35f   : > { %v3188_v38 = vadd.f32 %v3001_v6, %v2860_v16 }
 0x361   : > { %v3210_v46 = vadd.f32 %v5258_v56, %v3188_v38  ;;  %v2869_v38 = vadd.f32 %v5244_v11, %v5217_v41 }
 0x363   : > { %3226 = vst [vmem:[%s5261_s24 + $0x8] sm:$0xff] %v3210_v46  ;;  %v2870_v46 = vadd.f32 %v5246_v26, %v5220_v0 }
 0x364   : > { %v2844_v12 = vpop.f32.mrf.mxu2 }
 0x365   : > { %v2857_v5 = vpop.f32.mrf.mxu3 }
 0x366   : > { %v2988_v13 = vpop.f32.mrf.mxu0  ;;  %v3003_v17 = vpop.f32.mrf.mxu1 }
 0x367   : > { %v3187_v7 = vadd.f32 %v2988_v13, %v2859_v63 }
 0x369   : > { %v3209_v9 = vadd.f32 %v5258_v56, %v3187_v7 }
 0x36b   : > { %3225 = vst [vmem:[%s5261_s24] sm:$0xff] %v3209_v9 }
 0x36c   : > { %v3014_v34 = vpop.f32.mrf.mxu2 }
 0x36d   : > { %v3189_v19 = vadd.f32 %v3014_v34, %v2861_v50  ;;  %v3027_v58 = vpop.f32.mrf.mxu3 }
 0x36e   : > { %v3190_v51 = vadd.f32 %v3027_v58, %v2862_v36  ;;  %v2990_v44 = vpop.f32.mrf.mxu0  ;;  %v3053_v33 = vpop.f32.mrf.mxu1 }
 0x36f   : > { %v3211_v10 = vadd.f32 %v5258_v56, %v3189_v19  ;;  %v3192_v14 = vadd.f32 %v3053_v33, %v2864_v20  ;;  %v2873_v20 = vadd.f32 %v5252_v21, %v5237_v31 }
 0x370   : > { %v3212_v42 = vadd.f32 %v5258_v56, %v3190_v51 }
 0x371   : > { %3227 = vst [vmem:[%s5261_s24 + $0x10] sm:$0xff] %v3211_v10  ;;  %v3214_v22 = vadd.f32 %v5258_v56, %v3192_v14 }
 0x372   : > { %3228 = vst [vmem:[%s5261_s24 + $0x18] sm:$0xff] %v3212_v42 }
 0x373   : > { %3230 = vst [vmem:[%s5261_s24 + $0x28] sm:$0xff] %v3214_v22 }
 0x374   : > { %v3016_v60 = vpop.f32.mrf.mxu2 }
 0x375   : > { %v3029_v35 = vpop.f32.mrf.mxu3 }
 0x376   : > { %v3040_v18 = vpop.f32.mrf.mxu0  ;;  %v3055_v29 = vpop.f32.mrf.mxu1 }
 0x377   : > { %v3191_v27 = vadd.f32 %v3040_v18, %v2863_v45 }
 0x379   : > { %v3213_v40 = vadd.f32 %v5258_v56, %v3191_v27 }
 0x37b   : > { %3229 = vst [vmem:[%s5261_s24 + $0x20] sm:$0xff] %v3213_v40 }
 0x37c   : > { %v3066_v4 = vpop.f32.mrf.mxu2 }
 0x37d   : > { %v3193_v30 = vadd.f32 %v3066_v4, %v2865_v23  ;;  %v3079_v3 = vpop.f32.mrf.mxu3 }
 0x37e   : > { %v3194_v28 = vadd.f32 %v3079_v3, %v2866_v47  ;;  %v3042_v59 = vpop.f32.mrf.mxu0  ;;  %v3105_v48 = vpop.f32.mrf.mxu1 }
 0x37f   : > { %v3215_v54 = vadd.f32 %v5258_v56, %v3193_v30  ;;  %v3196_v53 = vadd.f32 %v3105_v48, %v2868_v49 }
 0x380   : > { %v3216_v16 = vadd.f32 %v5258_v56, %v3194_v28 }
 0x381   : > { %3231 = vst [vmem:[%s5261_s24 + $0x30] sm:$0xff] %v3215_v54  ;;  %v3218_v57 = vadd.f32 %v5258_v56, %v3196_v53 }
 0x382   : > { %3232 = vst [vmem:[%s5261_s24 + $0x38] sm:$0xff] %v3216_v16 }
 0x383   : > { %3234 = vst [vmem:[%s5261_s24 + $0x48] sm:$0xff] %v3218_v57 }
 0x384   : > { %v3068_v39 = vpop.f32.mrf.mxu2 }
 0x385   : > { %v3081_v32 = vpop.f32.mrf.mxu3 }
 0x386   : > { %v3092_v25 = vpop.f32.mrf.mxu0  ;;  %v3107_v37 = vpop.f32.mrf.mxu1 }
 0x387   : > { %v3195_v2 = vadd.f32 %v3092_v25, %v2867_v15 }
 0x389   : > { %v3217_v6 = vadd.f32 %v5258_v56, %v3195_v2 }
 0x38b   : > { %3233 = vst [vmem:[%s5261_s24 + $0x40] sm:$0xff] %v3217_v6 }
 0x38c   : > { %v3118_v12 = vpop.f32.mrf.mxu2 }
 0x38d   : > { %v3197_v8 = vadd.f32 %v3118_v12, %v2869_v38  ;;  %v3131_v63 = vpop.f32.mrf.mxu3 }
 0x38e   : > { %v3198_v5 = vadd.f32 %v3131_v63, %v2870_v46  ;;  %v3094_v13 = vpop.f32.mrf.mxu0  ;;  %v3157_v17 = vpop.f32.mrf.mxu1 }
 0x38f   : > { %v3219_v7 = vadd.f32 %v5258_v56, %v3197_v8  ;;  %v3200_v9 = vadd.f32 %v3157_v17, %v2872_v43 }
 0x390   : > { %v3220_v41 = vadd.f32 %v5258_v56, %v3198_v5 }
 0x391   : > { %3235 = vst [vmem:[%s5261_s24 + $0x50] sm:$0xff] %v3219_v7  ;;  %v3222_v11 = vadd.f32 %v5258_v56, %v3200_v9 }
 0x392   : > { %3236 = vst [vmem:[%s5261_s24 + $0x58] sm:$0xff] %v3220_v41 }
 0x393   : > { %3238 = vst [vmem:[%s5261_s24 + $0x68] sm:$0xff] %v3222_v11 }
 0x394   : > { %v3120_v0 = vpop.f32.mrf.mxu2 }
 0x395   : > { %v3133_v26 = vpop.f32.mrf.mxu3 }
 0x396   : > { %v3144_v61 = vpop.f32.mrf.mxu0  ;;  %v3159_v50 = vpop.f32.mrf.mxu1 }
 0x397   : > { %v3199_v36 = vadd.f32 %v3144_v61, %v2871_v1 }
 0x399   : > { %v3221_v34 = vadd.f32 %v5258_v56, %v3199_v36 }
 0x39b   : > { %3237 = vst [vmem:[%s5261_s24 + $0x60] sm:$0xff] %v3221_v34 }
 0x39c   : > { %v3170_v55 = vpop.f32.mrf.mxu2 }
 0x39d   : > { %v3201_v19 = vadd.f32 %v3170_v55, %v2873_v20  ;;  %v3183_v58 = vpop.f32.mrf.mxu3 }
 0x39e   : > { %v3202_v51 = vadd.f32 %v3183_v58, %v2874_v24  ;;  %v3146_v44 = vpop.f32.mrf.mxu0 }
 0x39f   : > { %v3223_v33 = vadd.f32 %v5258_v56, %v3201_v19 }
 0x3a0   : > { %v3224_v10 = vadd.f32 %v5258_v56, %v3202_v51 }
 0x3a1   : > { %3239 = vst [vmem:[%s5261_s24 + $0x70] sm:$0xff] %v3223_v33 }
 0x3a2   : > { %3240 = vst [vmem:[%s5261_s24 + $0x78] sm:$0xff] %v3224_v10 }
 0x3a3   : > { %3707 = shalt.err (!%p3704_p8)
}
 0x3a4   : > { %3538 = dma.vmem_to_hbm [thread:$0]  (%p5384_p9), %s3256_s22, 2048, %s3258_s9, %s3242_s18   ;;  %v3172_v31 = vpop.f32.mrf.mxu2 }
 0x3a5   : > { %v3185_v62 = vpop.f32.mrf.mxu3 }
 0x3a6 PF: > { %s5385_s13 = sld [smem:[#allocation11_spill]]  ;;  %p3544_p10 = scmp.ge.s32.totalorder %s3774_s21, 2 }
 0x3a7   : > { %s5386_s25 = sld [smem:[#allocation16_spill]] }
 0x3ac   : > { %s3269_s6 = sand.u32 1, %s5385_s13  }
 0x3ad   : > { %p5387_p12 = scmp.ne.s32.totalorder %s5386_s25, 0  ;;  %s3270_s30 = scalar_lea.sflag [#allocation4], %s3269_s6 }
 0x3af   : > { %p3541_p13 = pnand %p3544_p10, %p5387_p12 }
 0x3b1   : > { %p3542_p7 = pneg %p3541_p13 }
 0x3b3   : > { %3745 = dma.done.wait (%p3542_p7), %s3270_s30, 2048  }
 0x3b4   : > { %3747 = vsyncadd (%p3542_p7), %s3270_s30, 4294965248  ;;  %s5388_s21 = sld [smem:[#allocation13_spill]]  ;;  %s5392_s15 = smov %s3754_s16 }
 0x3b5   : > { %s5389_s14 = sld [smem:[#allocation15_spill]]  ;;  %s5393_s16 = smov %s3758_s17 }
 0x3b6   : > { %s5390_s12 = sld [smem:[#allocation12_spill]]  ;;  %s5395_s18 = smov %s3766_s19 }
 0x3b7   : > { %s5391_s20 = sld [smem:[#allocation14_spill]] }
 0x3ba   : > { %p20_p0 = scmp.ge.s32.totalorder %s5388_s21, 6  }
 0x3bb   : > { %s5394_s17 = smov %s5389_s14 }
 0x3bc   : > { %s5396_s19 = smov %s5390_s12  ;;  %22 = sbr.rel (!%p20_p0) target bundleno = 9 (0x9), region = 102 }
 0x3c1   :  { %3276 = vsyncpa [#allocation3], 1 }
 0x3c2   :  { %3278 = vsyncpa [#allocation3 + $0x1], 1 }
 0x3c3   :  { %3279 = vsyncpa [#allocation6], 1 }
 0x3c4   :  { %3281 = vsyncpa [#allocation6 + $0x1], 1 }
 0x3c5   :  { %3282 = vsyncpa [#allocation4], 1 }
 0x3c6   :  { %3284 = vsyncpa [#allocation4 + $0x1], 1 }

</bundles_post_ra>
